<compile_context>
chip_gen: v7x
topology: tpu7x:2x2x1
jax: 0.10.0
libtpu: 0.0.40
codegen_flags: <defaults>
</compile_context>

<pallas_src>
import functools
import jax
import jax.numpy as jnp
from jax import lax
from jax.experimental import pallas as pl
from jax.experimental.pallas import tpu as pltpu

LANES = 128


def _round_up(x, m):
    return (x + m - 1) // m * m


def _pick_batch_tile(n):
    """Images per grid step.  Keep >= 2 grid steps when possible (v7x: 2 TCs)."""
    if n <= 2:
        return 1
    bt = min(4, n // 2)
    while n % bt:
        bt -= 1
    return max(1, bt)


def _pick_row_block(ho, wo, cp):
    """Output-row block so fp32 accumulator + bf16 tap operand stay ~<= 96 KiB."""
    per_row = wo * (3 * cp * 2 + cp * 4)          # bf16 K=3*CP row + f32 acc row
    hb = max(1, min(ho, max(8, 98304 // max(per_row, 1))))
    while ho % hb:
        hb -= 1
    return hb


# ----------------------------------------------------------------------------
# Fused Pallas kernel
# ----------------------------------------------------------------------------
def _feature_conv_kernel(patches_ref, w1_ref, w2s_ref, w3s_ref, sh1_ref, sh2_ref,
                         o_ref, l2_buf, s3_buf, *,
                         b_tile, cp, s2, h1, w1, h2, w2, h3, w3,
                         hb1, hb2, hb3):
    f32 = jnp.float32
    bf16 = jnp.bfloat16

    def stage_rows(y_blk, s_ref, row0):
        """Write a (hb, wo, cp) bf16 block into rows [row0, row0+hb) of a
        kx-staged buffer of shape (Hi+2, wo, 3*cp):
          lane block 0: left-pad  (tap kx=0), block 1: center (kx=1),
          lane block 2: right-pad (tap kx=2)."""
        hb, wo, _ = y_blk.shape
        zc = jnp.zeros((hb, 1, cp), y_blk.dtype)
        p0 = jnp.concatenate([zc, y_blk[:, :wo - 1, :]], axis=1)
        p2 = jnp.concatenate([y_blk[:, 1:, :], zc], axis=1)
        s_ref[row0:row0 + hb, :, :] = jnp.concatenate([p0, y_blk, p2], axis=2)

    # --- zero only the halo rows/cols, every grid step (megacore-safe: no
    #     program_id gating).  Interior is fully overwritten per image. -------
    if s2 == 1:
        l2_buf[0:1, :, :] = jnp.zeros((1, w1, 3 * cp), bf16)
        l2_buf[h1 + 1:h1 + 2, :, :] = jnp.zeros((1, w1, 3 * cp), bf16)
    else:
        l2_buf[0:1, :, :] = jnp.zeros((1, w1 + 2, cp), bf16)
        l2_buf[h1 + 1:h1 + 2, :, :] = jnp.zeros((1, w1 + 2, cp), bf16)
        l2_buf[:, 0:1, :] = jnp.zeros((h1 + 2, 1, cp), bf16)
        l2_buf[:, w1 + 1:w1 + 2, :] = jnp.zeros((h1 + 2, 1, cp), bf16)
    s3_buf[0:1, :, :] = jnp.zeros((1, w2, 3 * cp), bf16)
    s3_buf[h2 + 1:h2 + 2, :, :] = jnp.zeros((1, w2, 3 * cp), bf16)

    sh1 = sh1_ref[...]                      # (1, cp) f32, hoisted broadcasts
    sh2 = sh2_ref[...]

    for b in range(b_tile):
        # ---------- layer 1: one GEMM per row block, K = 9*Cin (lane-padded) --
        for rb in range(h1 // hb1):
            r0 = rb * hb1
            x = patches_ref[b, r0 * w1:(r0 + hb1) * w1, :]
            acc = jnp.dot(x, w1_ref[...], preferred_element_type=f32)
            y = jnp.maximum(acc + sh1, 0.0).astype(bf16).reshape(hb1, w1, cp)
            if s2 == 1:
                stage_rows(y, l2_buf, 1 + r0)
            else:
                l2_buf[1 + r0:1 + r0 + hb1, 1:1 + w1, :] = y

        # ---------- layer 2 ---------------------------------------------------
        if s2 == 1:
            for rb in range(h2 // hb2):
                r0 = rb * hb2
                acc = None
                for ky in range(3):
                    xs = l2_buf[ky + r0:ky + r0 + hb2, :, :]
                    xs = xs.reshape(hb2 * w2, 3 * cp)
                    d = jnp.dot(xs, w2s_ref[ky], preferred_element_type=f32)
                    acc = d if acc is None else acc + d
                y = jnp.maximum(acc + sh2, 0.0).astype(bf16).reshape(hb2, w2, cp)
                stage_rows(y, s3_buf, 1 + r0)
        else:
            # stride-2 second conv (input_size == 4 * output_size).
            # Not exercised by the self-test below; kept simple (9 strided taps).
            acc = None
            for ky in range(3):
                for kx in range(3):
                    xs = l2_buf[pl.ds(ky, h2, 2), pl.ds(kx, w2, 2), :]
                    xs = xs.reshape(h2 * w2, cp)
                    d = jnp.dot(xs, w2s_ref[ky, kx * cp:(kx + 1) * cp, :],
                                preferred_element_type=f32)
                    acc = d if acc is None else acc + d
            y = jnp.maximum(acc + sh2, 0.0).astype(bf16).reshape(h2, w2, cp)
            stage_rows(y, s3_buf, 1)

        # ---------- layer 3: stride 1, no BN, ReLU ----------------------------
        for rb in range(h3 // hb3):
            r0 = rb * hb3
            acc = None
            for ky in range(3):
                xs = s3_buf[ky + r0:ky + r0 + hb3, :, :].reshape(hb3 * w3, 3 * cp)
                d = jnp.dot(xs, w3s_ref[ky], preferred_element_type=f32)
                acc = d if acc is None else acc + d
            o_ref[b, r0:r0 + hb3, :, :] = (
                jnp.maximum(acc, 0.0).reshape(hb3, w3, cp).astype(o_ref.dtype))


# ----------------------------------------------------------------------------
# Wrapper-side preparation
# ----------------------------------------------------------------------------
def _prep_w1(w_oihw, scale, k1p, cp):
    """(Cout,Cin,3,3) -> (k1p, cp) bf16; row order = (ky*3+kx)*Cin + ci."""
    co, ci, kh, kw = w_oihw.shape
    wf = jnp.transpose(w_oihw, (2, 3, 1, 0)).reshape(kh * kw * ci, co)
    wf = wf * scale[None, :]
    wf = jnp.pad(wf, ((0, k1p - kh * kw * ci), (0, cp - co)))
    return wf.astype(jnp.bfloat16)


def _prep_w33(w_oihw, scale, cp):
    """(Cout,Cin,3,3) -> (3, 3*cp, cp) bf16; for ky: row index = kx*cp + ci."""
    co, ci, kh, kw = w_oihw.shape
    wt = jnp.transpose(w_oihw, (2, 3, 1, 0))                 # (3,3,ci,co)
    if scale is not None:
        wt = wt * scale
    wt = jnp.pad(wt, ((0, 0), (0, 0), (0, cp - ci), (0, cp - co)))
    return wt.reshape(3, 3 * cp, cp).astype(jnp.bfloat16)


def _prep_shift(shift, cp):
    return jnp.pad(shift, (0, cp - shift.shape[0])).reshape(1, cp) \
              .astype(jnp.float32)


def feature_conv_forward(x_nchw, params, stride1, stride2):
    """Matches FeatureConv.forward (eval mode).  NCHW in / NCHW out."""
    N, Cin, H, W = x_nchw.shape
    Cout = params["w1"].shape[0]
    CP = _round_up(Cout, LANES)
    K1 = 9 * Cin
    K1P = _round_up(K1, LANES)

    H1 = (H + 2 - 3) // stride1 + 1
    W1 = (W + 2 - 3) // stride1 + 1
    H2 = (H1 + 2 - 3) // stride2 + 1
    W2 = (W1 + 2 - 3) // stride2 + 1
    H3, W3 = H2, W2

    # Layer-1 im2col in the wrapper (bf16 BEFORE the pad/slice pass).
    x = jnp.transpose(x_nchw, (0, 2, 3, 1)).astype(jnp.bfloat16)   # NHWC
    xp = jnp.pad(x, ((0, 0), (1, 1), (1, 1), (0, 0)))
    taps = [xp[:, ky:ky + stride1 * (H1 - 1) + 1:stride1,
               kx:kx + stride1 * (W1 - 1) + 1:stride1, :]
            for ky in range(3) for kx in range(3)]
    patches = jnp.concatenate(taps, axis=-1)                       # (N,H1,W1,9Cin)
    patches = jnp.pad(patches, ((0, 0), (0, 0), (0, 0), (0, K1P - K1)))
    patches = patches.reshape(N, H1 * W1, K1P)

    w1_p = _prep_w1(params["w1"], params["sc1"], K1P, CP)
    w2_p = _prep_w33(params["w2"], params["sc2"], CP)
    w3_p = _prep_w33(params["w3"], None, CP)
    sh1 = _prep_shift(params["sh1"], CP)
    sh2 = _prep_shift(params["sh2"], CP)

    B_TILE = _pick_batch_tile(N)
    HB1 = _pick_row_block(H1, W1, CP)
    HB2 = H2 if stride2 == 2 else _pick_row_block(H2, W2, CP)
    HB3 = _pick_row_block(H3, W3, CP)

    if stride2 == 1:
        l2_scratch = pltpu.VMEM((H1 + 2, W1, 3 * CP), jnp.bfloat16)
        l2_bytes = (H1 + 2) * W1 * 3 * CP * 2
    else:
        l2_scratch = pltpu.VMEM((H1 + 2, W1 + 2, CP), jnp.bfloat16)
        l2_bytes = (H1 + 2) * (W1 + 2) * CP * 2
    s3_scratch = pltpu.VMEM((H2 + 2, W2, 3 * CP), jnp.bfloat16)

    # VMEM budget: double-buffered blocks + weights + scratch + in-kernel temps.
    blk_in = B_TILE * H1 * W1 * K1P * 2
    blk_w = K1P * CP * 2 + 2 * 3 * 3 * CP * CP * 2 + 2 * CP * 4
    blk_out = B_TILE * H3 * W3 * CP * 4
    scratch_bytes = l2_bytes + (H2 + 2) * W2 * 3 * CP * 2
    rb_rows = max(HB1 * W1, HB2 * W2, HB3 * W3)
    temp_bytes = 2 * rb_rows * (3 * CP * 2 + 2 * CP * 4)
    vmem_limit = 2 * (blk_in + blk_w + blk_out) + scratch_bytes + temp_bytes \
        + (4 << 20)
    vmem_limit = int(min(48 << 20, max(16 << 20, vmem_limit)))

    kernel = functools.partial(
        _feature_conv_kernel, b_tile=B_TILE, cp=CP, s2=stride2,
        h1=H1, w1=W1, h2=H2, w2=W2, h3=H3, w3=W3,
        hb1=HB1, hb2=HB2, hb3=HB3)

    out_full = pl.pallas_call(
        kernel,
        out_shape=jax.ShapeDtypeStruct((N, H3, W3, CP), jnp.float32),
        grid_spec=pltpu.PrefetchScalarGridSpec(
            num_scalar_prefetch=0,
            grid=(N // B_TILE,),
            in_specs=[
                pl.BlockSpec((B_TILE, H1 * W1, K1P), lambda g: (g, 0, 0)),
                pl.BlockSpec((K1P, CP), lambda g: (0, 0)),
                pl.BlockSpec((3, 3 * CP, CP), lambda g: (0, 0, 0)),
                pl.BlockSpec((3, 3 * CP, CP), lambda g: (0, 0, 0)),
                pl.BlockSpec((1, CP), lambda g: (0, 0)),
                pl.BlockSpec((1, CP), lambda g: (0, 0)),
            ],
            out_specs=pl.BlockSpec((B_TILE, H3, W3, CP), lambda g: (g, 0, 0, 0)),
            scratch_shapes=[l2_scratch, s3_scratch],
        ),
        compiler_params=pltpu.CompilerParams(
            dimension_semantics=("parallel",),
            vmem_limit_bytes=vmem_limit),
    )(patches, w1_p, w2_p, w3_p, sh1, sh2)

    # Note: consumers that tolerate NHWC / padded channels / bf16 can skip this
    # slice + transpose (and switch out_shape dtype) to save two HBM passes.
    out = out_full[..., :Cout]
    return jnp.transpose(out, (0, 3, 1, 2))                        # NHWC -> NCHW


# ----------------------------------------------------------------------------
# Deterministic parameter construction + pure-JAX fp32 reference
# ----------------------------------------------------------------------------
def make_params(key, cin, cout, eps=1e-5):
    ks = jax.random.split(key, 11)

    def conv_w(k, ci, co):
        return jax.random.normal(k, (co, ci, 3, 3), jnp.float32) * 0.1

    def bn(k1, k2, k3, k4, c):
        gamma = jax.random.uniform(k1, (c,), jnp.float32, 0.5, 1.5)
        beta = jax.random.normal(k2, (c,), jnp.float32) * 0.1
        mean = jax.random.normal(k3, (c,), jnp.float32) * 0.1
        var = jax.random.uniform(k4, (c,), jnp.float32, 0.5, 1.5)
        scale = gamma / jnp.sqrt(var + eps)
        shift = beta - mean * scale
        return scale, shift

    w1 = conv_w(ks[0], cin, cout)
    w2 = conv_w(ks[1], cout, cout)
    w3 = conv_w(ks[2], cout, cout)
    sc1, sh1 = bn(ks[3], ks[4], ks[5], ks[6], cout)
    sc2, sh2 = bn(ks[7], ks[8], ks[9], ks[10], cout)
    return dict(w1=w1, w2=w2, w3=w3, sc1=sc1, sh1=sh1, sc2=sc2, sh2=sh2)


def _ref_conv(x_nhwc, w_oihw, scale, shift, stride):
    w_hwio = jnp.transpose(w_oihw, (2, 3, 1, 0))
    y = lax.conv_general_dilated(
        x_nhwc, w_hwio, window_strides=(stride, stride),
        padding=((1, 1), (1, 1)),
        dimension_numbers=("NHWC", "HWIO", "NHWC"))
    return jnp.maximum(y * scale + shift, 0.0)


def reference_forward(x_nchw, params, stride1, stride2):
    x = jnp.transpose(x_nchw, (0, 2, 3, 1))
    x = _ref_conv(x, params["w1"], params["sc1"], params["sh1"], stride1)
    x = _ref_conv(x, params["w2"], params["sc2"], params["sh2"], stride2)
    cout = params["w3"].shape[0]
    x = _ref_conv(x, params["w3"], jnp.ones((cout,)), jnp.zeros((cout,)), 1)
    return jnp.transpose(x, (0, 3, 1, 2))


# ----------------------------------------------------------------------------
if __name__ == "__main__":
    # Same stride branch as the module defaults (32 -> 16): input = 2 * output.
    batch, input_dim, output_dim = 2, 8, 16
    input_size, output_size = 16, 8
    if input_size == output_size * 4:
        stride1, stride2 = 2, 2
    elif input_size == output_size * 2:
        stride1, stride2 = 2, 1
    else:
        stride1, stride2 = 1, 1

    key = jax.random.PRNGKey(0)
    kx, kp = jax.random.split(key)
    x = jax.random.normal(kx, (batch, input_dim, input_size, input_size),
                          jnp.float32)
    params = make_params(kp, input_dim, output_dim)

    fwd = jax.jit(functools.partial(feature_conv_forward,
                                    stride1=stride1, stride2=stride2))
    out = fwd(x, params)
    jax.block_until_ready(out)

    ref = reference_forward(x, params, stride1, stride2)
    assert out.shape == (batch, output_dim, output_size, output_size), out.shape
    # bf16 matmul operands + bf16 VMEM-resident intermediates -> loose tolerance.
    err = float(jnp.max(jnp.abs(out - ref)))
    assert jnp.allclose(out, ref, atol=5e-2, rtol=5e-2), f"max abs err {err}"

    print("KERNEL_OK")
</pallas_src>

<mosaic_0001>
module attributes {stable_mosaic.version = 11 : i64} {
  func.func @_feature_conv_kernel(%arg0: i32, %arg1: memref<1x64x128xbf16, #tpu.memory_space<vmem>>, %arg2: memref<128x128xbf16, #tpu.memory_space<vmem>>, %arg3: memref<3x384x128xbf16, #tpu.memory_space<vmem>>, %arg4: memref<3x384x128xbf16, #tpu.memory_space<vmem>>, %arg5: memref<1x128xf32, #tpu.memory_space<vmem>>, %arg6: memref<1x128xf32, #tpu.memory_space<vmem>>, %arg7: memref<1x8x8x128xf32, #tpu.memory_space<vmem>>, %arg8: memref<10x8x384xbf16, #tpu.memory_space<vmem>>, %arg9: memref<10x8x384xbf16, #tpu.memory_space<vmem>>) attributes {dimension_semantics = [#tpu.dimension_semantics<parallel>], iteration_bounds = array<i64: 2>, scalar_prefetch = 0 : i64, scratch_operands = 2 : i64, tpu.core_type = #tpu.core_type<tc>, window_params = [{transform_indices = @transform_0, window_bounds = array<i64: 1, 64, 128>}, {pipeline_mode = #tpu.pipeline_mode<synchronous>, transform_indices = @transform_1, window_bounds = array<i64: 128, 128>}, {pipeline_mode = #tpu.pipeline_mode<synchronous>, transform_indices = @transform_2, window_bounds = array<i64: 3, 384, 128>}, {pipeline_mode = #tpu.pipeline_mode<synchronous>, transform_indices = @transform_3, window_bounds = array<i64: 3, 384, 128>}, {pipeline_mode = #tpu.pipeline_mode<synchronous>, transform_indices = @transform_4, window_bounds = array<i64: 1, 128>}, {pipeline_mode = #tpu.pipeline_mode<synchronous>, transform_indices = @transform_5, window_bounds = array<i64: 1, 128>}, {transform_indices = @transform_6, window_bounds = array<i64: 1, 8, 8, 128>}]} {
    %cst = arith.constant 0.000000e+00 : bf16
    %0 = vector.broadcast %cst : bf16 to vector<1x8x384xbf16>
    %c0 = arith.constant 0 : index
    %c0_0 = arith.constant 0 : index
    %c0_1 = arith.constant 0 : index
    %1 = vector.load %arg8[%c0, %c0_0, %c0_1] : memref<10x8x384xbf16, #tpu.memory_space<vmem>>, vector<1x8x384xbf16>
    tpu.vector_store %arg8[%c0, %c0_0, %c0_1], %0 {strides = array<i32>} : memref<10x8x384xbf16, #tpu.memory_space<vmem>>, vector<1x8x384xbf16>,
    %cst_2 = arith.constant 0.000000e+00 : bf16
    %2 = vector.broadcast %cst_2 : bf16 to vector<1x8x384xbf16>
    %c9 = arith.constant 9 : index
    %c0_3 = arith.constant 0 : index
    %c0_4 = arith.constant 0 : index
    %3 = vector.load %arg8[%c9, %c0_3, %c0_4] : memref<10x8x384xbf16, #tpu.memory_space<vmem>>, vector<1x8x384xbf16>
    tpu.vector_store %arg8[%c9, %c0_3, %c0_4], %2 {strides = array<i32>} : memref<10x8x384xbf16, #tpu.memory_space<vmem>>, vector<1x8x384xbf16>,
    %cst_5 = arith.constant 0.000000e+00 : bf16
    %4 = vector.broadcast %cst_5 : bf16 to vector<1x8x384xbf16>
    %c0_6 = arith.constant 0 : index
    %c0_7 = arith.constant 0 : index
    %c0_8 = arith.constant 0 : index
    %5 = vector.load %arg9[%c0_6, %c0_7, %c0_8] : memref<10x8x384xbf16, #tpu.memory_space<vmem>>, vector<1x8x384xbf16>
    tpu.vector_store %arg9[%c0_6, %c0_7, %c0_8], %4 {strides = array<i32>} : memref<10x8x384xbf16, #tpu.memory_space<vmem>>, vector<1x8x384xbf16>,
    %cst_9 = arith.constant 0.000000e+00 : bf16
    %6 = vector.broadcast %cst_9 : bf16 to vector<1x8x384xbf16>
    %c9_10 = arith.constant 9 : index
    %c0_11 = arith.constant 0 : index
    %c0_12 = arith.constant 0 : index
    %7 = vector.load %arg9[%c9_10, %c0_11, %c0_12] : memref<10x8x384xbf16, #tpu.memory_space<vmem>>, vector<1x8x384xbf16>
    tpu.vector_store %arg9[%c9_10, %c0_11, %c0_12], %6 {strides = array<i32>} : memref<10x8x384xbf16, #tpu.memory_space<vmem>>, vector<1x8x384xbf16>,
    %c0_13 = arith.constant 0 : index
    %c0_14 = arith.constant 0 : index
    %8 = vector.load %arg5[%c0_13, %c0_14] : memref<1x128xf32, #tpu.memory_space<vmem>>, vector<1x128xf32>
    %c0_15 = arith.constant 0 : index
    %c0_16 = arith.constant 0 : index
    %9 = vector.load %arg6[%c0_15, %c0_16] : memref<1x128xf32, #tpu.memory_space<vmem>>, vector<1x128xf32>
    %c0_17 = arith.constant 0 : index
    %c0_18 = arith.constant 0 : index
    %c0_19 = arith.constant 0 : index
    %10 = vector.load %arg1[%c0_17, %c0_18, %c0_19] : memref<1x64x128xbf16, #tpu.memory_space<vmem>>, vector<1x64x128xbf16>
    %11 = vector.shape_cast %10 : vector<1x64x128xbf16> to vector<64x128xbf16>
    %c0_20 = arith.constant 0 : index
    %c0_21 = arith.constant 0 : index
    %12 = vector.load %arg2[%c0_20, %c0_21] : memref<128x128xbf16, #tpu.memory_space<vmem>>, vector<128x128xbf16>
    %cst_22 = arith.constant dense<0.000000e+00> : vector<64x128xf32>
    %13 = tpu.matmul %11, %12, %cst_22 {dimension_numbers = #tpu.dot_dimension_numbers<[1], [0], [0], [1], [0, 0, 1, 1], [], []>} : vector<64x128xbf16>, vector<128x128xbf16>, vector<64x128xf32> -> vector<64x128xf32>
    %14 = vector.broadcast %8 : vector<1x128xf32> to vector<64x128xf32>
    %15 = arith.addf %13, %14 : vector<64x128xf32>
    %cst_23 = arith.constant 0.000000e+00 : f32
    %16 = vector.broadcast %cst_23 : f32 to vector<64x128xf32>
    %17 = arith.maximumf %15, %16 : vector<64x128xf32>
    %18 = arith.truncf %17 : vector<64x128xf32> to vector<64x128xbf16>
    %19 = vector.shape_cast %18 : vector<64x128xbf16> to vector<8x8x128xbf16>
    %cst_24 = arith.constant 0.000000e+00 : bf16
    %20 = vector.broadcast %cst_24 : bf16 to vector<8x1x128xbf16>
    %21 = vector.extract_strided_slice %19 {offsets = [0, 0, 0], sizes = [8, 7, 128], strides = [1, 1, 1]} : vector<8x8x128xbf16> to vector<8x7x128xbf16>
    %22 = tpu.concatenate %20, %21 in 1 : vector<8x1x128xbf16>, vector<8x7x128xbf16> -> vector<8x8x128xbf16>
    %23 = vector.extract_strided_slice %19 {offsets = [0, 1, 0], sizes = [8, 7, 128], strides = [1, 1, 1]} : vector<8x8x128xbf16> to vector<8x7x128xbf16>
    %24 = tpu.concatenate %23, %20 in 1 : vector<8x7x128xbf16>, vector<8x1x128xbf16> -> vector<8x8x128xbf16>
    %25 = tpu.concatenate %22, %19, %24 in 2 : vector<8x8x128xbf16>, vector<8x8x128xbf16>, vector<8x8x128xbf16> -> vector<8x8x384xbf16>
    %c1 = arith.constant 1 : index
    %c0_25 = arith.constant 0 : index
    %c0_26 = arith.constant 0 : index
    %26 = vector.load %arg8[%c1, %c0_25, %c0_26] : memref<10x8x384xbf16, #tpu.memory_space<vmem>>, vector<8x8x384xbf16>
    tpu.vector_store %arg8[%c1, %c0_25, %c0_26], %25 {strides = array<i32>} : memref<10x8x384xbf16, #tpu.memory_space<vmem>>, vector<8x8x384xbf16>,
    %c0_27 = arith.constant 0 : index
    %c0_28 = arith.constant 0 : index
    %c0_29 = arith.constant 0 : index
    %27 = vector.load %arg8[%c0_27, %c0_28, %c0_29] : memref<10x8x384xbf16, #tpu.memory_space<vmem>>, vector<8x8x384xbf16>
    %28 = vector.shape_cast %27 : vector<8x8x384xbf16> to vector<64x384xbf16>
    %c0_30 = arith.constant 0 : index
    %c0_31 = arith.constant 0 : index
    %c0_32 = arith.constant 0 : index
    %29 = vector.load %arg3[%c0_30, %c0_31, %c0_32] : memref<3x384x128xbf16, #tpu.memory_space<vmem>>, vector<1x384x128xbf16>
    %30 = vector.shape_cast %29 : vector<1x384x128xbf16> to vector<384x128xbf16>
    %cst_33 = arith.constant dense<0.000000e+00> : vector<64x128xf32>
    %31 = tpu.matmul %28, %30, %cst_33 {dimension_numbers = #tpu.dot_dimension_numbers<[1], [0], [0], [1], [0, 0, 1, 1], [], []>} : vector<64x384xbf16>, vector<384x128xbf16>, vector<64x128xf32> -> vector<64x128xf32>
    %c1_34 = arith.constant 1 : index
    %c0_35 = arith.constant 0 : index
    %c0_36 = arith.constant 0 : index
    %32 = vector.load %arg8[%c1_34, %c0_35, %c0_36] : memref<10x8x384xbf16, #tpu.memory_space<vmem>>, vector<8x8x384xbf16>
    %33 = vector.shape_cast %32 : vector<8x8x384xbf16> to vector<64x384xbf16>
    %c1_37 = arith.constant 1 : index
    %c0_38 = arith.constant 0 : index
    %c0_39 = arith.constant 0 : index
    %34 = vector.load %arg3[%c1_37, %c0_38, %c0_39] : memref<3x384x128xbf16, #tpu.memory_space<vmem>>, vector<1x384x128xbf16>
    %35 = vector.shape_cast %34 : vector<1x384x128xbf16> to vector<384x128xbf16>
    %cst_40 = arith.constant dense<0.000000e+00> : vector<64x128xf32>
    %36 = tpu.matmul %33, %35, %cst_40 {dimension_numbers = #tpu.dot_dimension_numbers<[1], [0], [0], [1], [0, 0, 1, 1], [], []>} : vector<64x384xbf16>, vector<384x128xbf16>, vector<64x128xf32> -> vector<64x128xf32>
    %37 = arith.addf %31, %36 : vector<64x128xf32>
    %c2 = arith.constant 2 : index
    %c0_41 = arith.constant 0 : index
    %c0_42 = arith.constant 0 : index
    %38 = vector.load %arg8[%c2, %c0_41, %c0_42] : memref<10x8x384xbf16, #tpu.memory_space<vmem>>, vector<8x8x384xbf16>
    %39 = vector.shape_cast %38 : vector<8x8x384xbf16> to vector<64x384xbf16>
    %c2_43 = arith.constant 2 : index
    %c0_44 = arith.constant 0 : index
    %c0_45 = arith.constant 0 : index
    %40 = vector.load %arg3[%c2_43, %c0_44, %c0_45] : memref<3x384x128xbf16, #tpu.memory_space<vmem>>, vector<1x384x128xbf16>
    %41 = vector.shape_cast %40 : vector<1x384x128xbf16> to vector<384x128xbf16>
    %cst_46 = arith.constant dense<0.000000e+00> : vector<64x128xf32>
    %42 = tpu.matmul %39, %41, %cst_46 {dimension_numbers = #tpu.dot_dimension_numbers<[1], [0], [0], [1], [0, 0, 1, 1], [], []>} : vector<64x384xbf16>, vector<384x128xbf16>, vector<64x128xf32> -> vector<64x128xf32>
    %43 = arith.addf %37, %42 : vector<64x128xf32>
    %44 = vector.broadcast %9 : vector<1x128xf32> to vector<64x128xf32>
    %45 = arith.addf %43, %44 : vector<64x128xf32>
    %cst_47 = arith.constant 0.000000e+00 : f32
    %46 = vector.broadcast %cst_47 : f32 to vector<64x128xf32>
    %47 = arith.maximumf %45, %46 : vector<64x128xf32>
    %48 = arith.truncf %47 : vector<64x128xf32> to vector<64x128xbf16>
    %49 = vector.shape_cast %48 : vector<64x128xbf16> to vector<8x8x128xbf16>
    %cst_48 = arith.constant 0.000000e+00 : bf16
    %50 = vector.broadcast %cst_48 : bf16 to vector<8x1x128xbf16>
    %51 = vector.extract_strided_slice %49 {offsets = [0, 0, 0], sizes = [8, 7, 128], strides = [1, 1, 1]} : vector<8x8x128xbf16> to vector<8x7x128xbf16>
    %52 = tpu.concatenate %50, %51 in 1 : vector<8x1x128xbf16>, vector<8x7x128xbf16> -> vector<8x8x128xbf16>
    %53 = vector.extract_strided_slice %49 {offsets = [0, 1, 0], sizes = [8, 7, 128], strides = [1, 1, 1]} : vector<8x8x128xbf16> to vector<8x7x128xbf16>
    %54 = tpu.concatenate %53, %50 in 1 : vector<8x7x128xbf16>, vector<8x1x128xbf16> -> vector<8x8x128xbf16>
    %55 = tpu.concatenate %52, %49, %54 in 2 : vector<8x8x128xbf16>, vector<8x8x128xbf16>, vector<8x8x128xbf16> -> vector<8x8x384xbf16>
    %c1_49 = arith.constant 1 : index
    %c0_50 = arith.constant 0 : index
    %c0_51 = arith.constant 0 : index
    %56 = vector.load %arg9[%c1_49, %c0_50, %c0_51] : memref<10x8x384xbf16, #tpu.memory_space<vmem>>, vector<8x8x384xbf16>
    tpu.vector_store %arg9[%c1_49, %c0_50, %c0_51], %55 {strides = array<i32>} : memref<10x8x384xbf16, #tpu.memory_space<vmem>>, vector<8x8x384xbf16>,
    %c0_52 = arith.constant 0 : index
    %c0_53 = arith.constant 0 : index
    %c0_54 = arith.constant 0 : index
    %57 = vector.load %arg9[%c0_52, %c0_53, %c0_54] : memref<10x8x384xbf16, #tpu.memory_space<vmem>>, vector<8x8x384xbf16>
    %58 = vector.shape_cast %57 : vector<8x8x384xbf16> to vector<64x384xbf16>
    %c0_55 = arith.constant 0 : index
    %c0_56 = arith.constant 0 : index
    %c0_57 = arith.constant 0 : index
    %59 = vector.load %arg4[%c0_55, %c0_56, %c0_57] : memref<3x384x128xbf16, #tpu.memory_space<vmem>>, vector<1x384x128xbf16>
    %60 = vector.shape_cast %59 : vector<1x384x128xbf16> to vector<384x128xbf16>
    %cst_58 = arith.constant dense<0.000000e+00> : vector<64x128xf32>
    %61 = tpu.matmul %58, %60, %cst_58 {dimension_numbers = #tpu.dot_dimension_numbers<[1], [0], [0], [1], [0, 0, 1, 1], [], []>} : vector<64x384xbf16>, vector<384x128xbf16>, vector<64x128xf32> -> vector<64x128xf32>
    %c1_59 = arith.constant 1 : index
    %c0_60 = arith.constant 0 : index
    %c0_61 = arith.constant 0 : index
    %62 = vector.load %arg9[%c1_59, %c0_60, %c0_61] : memref<10x8x384xbf16, #tpu.memory_space<vmem>>, vector<8x8x384xbf16>
    %63 = vector.shape_cast %62 : vector<8x8x384xbf16> to vector<64x384xbf16>
    %c1_62 = arith.constant 1 : index
    %c0_63 = arith.constant 0 : index
    %c0_64 = arith.constant 0 : index
    %64 = vector.load %arg4[%c1_62, %c0_63, %c0_64] : memref<3x384x128xbf16, #tpu.memory_space<vmem>>, vector<1x384x128xbf16>
    %65 = vector.shape_cast %64 : vector<1x384x128xbf16> to vector<384x128xbf16>
    %cst_65 = arith.constant dense<0.000000e+00> : vector<64x128xf32>
    %66 = tpu.matmul %63, %65, %cst_65 {dimension_numbers = #tpu.dot_dimension_numbers<[1], [0], [0], [1], [0, 0, 1, 1], [], []>} : vector<64x384xbf16>, vector<384x128xbf16>, vector<64x128xf32> -> vector<64x128xf32>
    %67 = arith.addf %61, %66 : vector<64x128xf32>
    %c2_66 = arith.constant 2 : index
    %c0_67 = arith.constant 0 : index
    %c0_68 = arith.constant 0 : index
    %68 = vector.load %arg9[%c2_66, %c0_67, %c0_68] : memref<10x8x384xbf16, #tpu.memory_space<vmem>>, vector<8x8x384xbf16>
    %69 = vector.shape_cast %68 : vector<8x8x384xbf16> to vector<64x384xbf16>
    %c2_69 = arith.constant 2 : index
    %c0_70 = arith.constant 0 : index
    %c0_71 = arith.constant 0 : index
    %70 = vector.load %arg4[%c2_69, %c0_70, %c0_71] : memref<3x384x128xbf16, #tpu.memory_space<vmem>>, vector<1x384x128xbf16>
    %71 = vector.shape_cast %70 : vector<1x384x128xbf16> to vector<384x128xbf16>
    %cst_72 = arith.constant dense<0.000000e+00> : vector<64x128xf32>
    %72 = tpu.matmul %69, %71, %cst_72 {dimension_numbers = #tpu.dot_dimension_numbers<[1], [0], [0], [1], [0, 0, 1, 1], [], []>} : vector<64x384xbf16>, vector<384x128xbf16>, vector<64x128xf32> -> vector<64x128xf32>
    %73 = arith.addf %67, %72 : vector<64x128xf32>
    %cst_73 = arith.constant 0.000000e+00 : f32
    %74 = vector.broadcast %cst_73 : f32 to vector<64x128xf32>
    %75 = arith.maximumf %73, %74 : vector<64x128xf32>
    %76 = vector.shape_cast %75 : vector<64x128xf32> to vector<8x8x128xf32>
    %c0_74 = arith.constant 0 : index
    %c0_75 = arith.constant 0 : index
    %c0_76 = arith.constant 0 : index
    %c0_77 = arith.constant 0 : index
    %77 = vector.load %arg7[%c0_74, %c0_75, %c0_76, %c0_77] : memref<1x8x8x128xf32, #tpu.memory_space<vmem>>, vector<1x8x8x128xf32>
    %78 = vector.shape_cast %77 : vector<1x8x8x128xf32> to vector<8x8x128xf32>
    %79 = vector.shape_cast %76 : vector<8x8x128xf32> to vector<1x8x8x128xf32>
    tpu.vector_store %arg7[%c0_74, %c0_75, %c0_76, %c0_77], %79 {strides = array<i32>} : memref<1x8x8x128xf32, #tpu.memory_space<vmem>>, vector<1x8x8x128xf32>,
    return
  }
  func.func @transform_0(%arg0: i32) -> (i32, i32, i32) {
    %c0_i32 = arith.constant 0 : i32
    %c0_i32_0 = arith.constant 0 : i32
    %c0_i32_1 = arith.constant 0 : i32
    return %arg0, %c0_i32, %c0_i32_0 : i32, i32, i32
  }
  func.func @transform_1(%arg0: i32) -> (i32, i32) {
    %c0_i32 = arith.constant 0 : i32
    %c0_i32_0 = arith.constant 0 : i32
    %c0_i32_1 = arith.constant 0 : i32
    return %c0_i32, %c0_i32_0 : i32, i32
  }
  func.func @transform_2(%arg0: i32) -> (i32, i32, i32) {
    %c0_i32 = arith.constant 0 : i32
    %c0_i32_0 = arith.constant 0 : i32
    %c0_i32_1 = arith.constant 0 : i32
    %c0_i32_2 = arith.constant 0 : i32
    return %c0_i32, %c0_i32_0, %c0_i32_1 : i32, i32, i32
  }
  func.func @transform_3(%arg0: i32) -> (i32, i32, i32) {
    %c0_i32 = arith.constant 0 : i32
    %c0_i32_0 = arith.constant 0 : i32
    %c0_i32_1 = arith.constant 0 : i32
    %c0_i32_2 = arith.constant 0 : i32
    return %c0_i32, %c0_i32_0, %c0_i32_1 : i32, i32, i32
  }
  func.func @transform_4(%arg0: i32) -> (i32, i32) {
    %c0_i32 = arith.constant 0 : i32
    %c0_i32_0 = arith.constant 0 : i32
    %c0_i32_1 = arith.constant 0 : i32
    return %c0_i32, %c0_i32_0 : i32, i32
  }
  func.func @transform_5(%arg0: i32) -> (i32, i32) {
    %c0_i32 = arith.constant 0 : i32
    %c0_i32_0 = arith.constant 0 : i32
    %c0_i32_1 = arith.constant 0 : i32
    return %c0_i32, %c0_i32_0 : i32, i32
  }
  func.func @transform_6(%arg0: i32) -> (i32, i32, i32, i32) {
    %c0_i32 = arith.constant 0 : i32
    %c0_i32_0 = arith.constant 0 : i32
    %c0_i32_1 = arith.constant 0 : i32
    %c0_i32_2 = arith.constant 0 : i32
    return %arg0, %c0_i32, %c0_i32_0, %c0_i32_1 : i32, i32, i32, i32
  }
}

</mosaic_0001>

<bundles_post_ra>
// kernel: feature_conv_forward.1
= control target key start
LH: loop header
LB: loop body
LE: loop exit
PB: predicated region body
PF: predicated region fallthrough
CT: control target
= control target key end

     0   :  { %s4736_s21 = smov 0   ;;  %s5501_s0 = inlined_call_operand.vmem [shape: bf16[2,64,128], index: 0, kind: input, shape index: {}]   ;;  %s5502_s1 = inlined_call_operand.vmem [shape: bf16[128,128], index: 1, kind: input, shape index: {}]   ;;  %s5503_s2 = inlined_call_operand.vmem [shape: bf16[3,384,128], index: 2, kind: input, shape index: {}]   ;;  %s5504_s3 = inlined_call_operand.vmem [shape: bf16[3,384,128], index: 3, kind: input, shape index: {}]   ;;  %s5505_s4 = inlined_call_operand.vmem [shape: f32[1,128], index: 4, kind: input, shape index: {}]   ;;  %s5506_s5 = inlined_call_operand.vmem [shape: f32[1,128], index: 5, kind: input, shape index: {}]   ;;  %s5507_s6 = inlined_call_operand.vmem [shape: f32[2,8,8,128], index: 6, kind: output, shape index: {}]  }
   0x1 LB: > { %s3391_s22 = sadd.s32 4294967295, %s4698_s21   ;;  %p3395_p0 = scmp.ge.s32.totalorder %s4698_s21, 1  ;;  %s4698_s21 = sphi %s4736_s21, %s16_s21  }
   0x2   : > { %p212_p1 = scmp.lt.s32.totalorder %s4698_s21, 3 }
   0x4   : > { %p213_p2 = pnand %p3395_p0, %p212_p1 }
   0x5   : > { %v4495_v0 = vld [vmem:[%s5502_s1] sm:$0xff] (!%p213_p2)   ;;  %p242_p3 = scmp.lt.s32.totalorder (!%p213_p2), %s3391_s22, 1  ;;  %v4496_v1 = vld [vmem:[%s5502_s1 + $0x8] sm:$0xff] (!%p213_p2)   ;;  %v4497_v2 = vld [vmem:[%s5502_s1 + $0x10] sm:$0xff] (!%p213_p2)   ;;  %v4700_v34 = vmov (!%p213_p2), 0   ;;  %vm563_vm0 = vcmask (!%p213_p2), 1043456  }
   0x6   : > { %216 = sbr.rel (%p213_p2) target bundleno = 901 (0x385), region = 44  ;;  %4222 = vmatprep.subr.bf16.mxu0 (!%p213_p2), %v4495_v0  ;;  %v4498_v3 = vld [vmem:[%s5502_s1 + $0x18] sm:$0xff] (!%p213_p2)   ;;  %v4499_v5 = vld [vmem:[%s5502_s1 + $0x20] sm:$0xff] (!%p213_p2)   ;;  %v4500_v8 = vld [vmem:[%s5502_s1 + $0x28] sm:$0xff] (!%p213_p2)   ;;  %254 = vst [vmem:[#allocation2 + $0x8] sm:$0xf] (!%p213_p2), %v4700_v34 }
   0x7   : > { %4223 = vmatpush3.bf16.msra.mxu0 (!%p213_p2), %v4495_v0  ;;  %v4507_v6 = vld [vmem:[%s5503_s2 + $0x100] sm:$0xff] (!%p213_p2)   ;;  %v4501_v9 = vld [vmem:[%s5502_s1 + $0x30] sm:$0xff] (!%p213_p2)   ;;  %v4502_v10 = vld [vmem:[%s5502_s1 + $0x38] sm:$0xff] (!%p213_p2)   ;;  %253 = vst [vmem:[#allocation2] sm:$0xff] (!%p213_p2), %v4700_v34  ;;  %vm564_vm1 = vsmask.f32 (!%p213_p2), 3328 }
   0x8   : > { %4224 = vmatprep.subr.bf16.mxu0 (!%p213_p2), %v4496_v1  ;;  %v4508_v7 = vld [vmem:[%s5503_s2 + $0xc0] sm:$0xff] (!%p213_p2)   ;;  %3910 = vmatprep.subr.bf16.mxu1 (!%p213_p2), %v4507_v6  ;;  %v4510_v15 = vld [vmem:[%s5503_s2 + $0x108] sm:$0xff] (!%p213_p2)   ;;  %v4513_v17 = vld [vmem:[%s5503_s2 + $0x110] sm:$0xff] (!%p213_p2)   ;;  %257 = vst [vmem:[#allocation2 + $0x74] sm:$0xf] (!%p213_p2), %v4700_v34  ;;  %vm528_vm2 = vcmask (!%p213_p2), 1040384  }
   0x9   : > { %3911 = vmatpush3.bf16.msra.mxu1 (!%p213_p2), %v4508_v7  ;;  %v4509_v11 = vld [vmem:[%s5503_s2 + $0x140] sm:$0xff] (!%p213_p2)   ;;  %v4511_v16 = vld [vmem:[%s5503_s2 + $0xc8] sm:$0xff] (!%p213_p2)   ;;  %v4514_v19 = vld [vmem:[%s5503_s2 + $0xd0] sm:$0xff] (!%p213_p2)   ;;  %259 = vst [vmem:[#allocation3 + $0x8] sm:$0xf] (!%p213_p2), %v4700_v34 }
   0xa   : > { %3912 = vmatprep.subr.bf16.mxu1 (!%p213_p2), %v4510_v15  ;;  %v4512_v18 = vld [vmem:[%s5503_s2 + $0x148] sm:$0xff] (!%p213_p2)   ;;  %v4515_v20 = vld [vmem:[%s5503_s2 + $0x150] sm:$0xff] (!%p213_p2)   ;;  %v4516_v21 = vld [vmem:[%s5503_s2 + $0x118] sm:$0xff] (!%p213_p2)   ;;  %262 = vst [vmem:[#allocation3 + $0x74] sm:$0xf] (!%p213_p2), %v4700_v34 }
   0xb   : > { %4225 = vmatpush3.bf16.msra.mxu0 (!%p213_p2), %v4496_v1  ;;  %v4517_v22 = vld [vmem:[%s5503_s2 + $0xd8] sm:$0xff] (!%p213_p2)   ;;  %v4519_v23 = vld [vmem:[%s5503_s2 + $0x120] sm:$0xff] (!%p213_p2)   ;;  %v4522_v26 = vld [vmem:[%s5503_s2 + $0x128] sm:$0xff] (!%p213_p2)   ;;  %vm529_vm3 = vsmask.f32 (!%p213_p2), 256 }
   0xc   : > { %4226 = vmatprep.subr.bf16.mxu0 (!%p213_p2), %v4497_v2  ;;  %v4518_v24 = vld [vmem:[%s5503_s2 + $0x158] sm:$0xff] (!%p213_p2)   ;;  %v4520_v25 = vld [vmem:[%s5503_s2 + $0xe0] sm:$0xff] (!%p213_p2)   ;;  %v4523_v27 = vld [vmem:[%s5503_s2 + $0xe8] sm:$0xff] (!%p213_p2)  }
   0xd   : > { %s5513_s22 = smov (!%p242_p3, %s3391_s22), 1  ;;  %3913 = vmatpush3.bf16.msra.mxu1 %v4511_v16  ;;  %v4521_v28 = vld [vmem:[%s5503_s2 + $0x160] sm:$0xff]   ;;  %v4525_v29 = vld [vmem:[%s5503_s2 + $0x130] sm:$0xff]   ;;  %v4524_v31 = vld [vmem:[%s5503_s2 + $0x168] sm:$0xff]  }
   0xe   : > { %s3880_s29 = sshll.u32 %s5513_s22, 5  ;;  %3914 = vmatprep.subr.bf16.mxu1 %v4513_v17  ;;  %v4526_v30 = vld [vmem:[%s5503_s2 + $0xf0] sm:$0xff]   ;;  %v4528_v32 = vld [vmem:[%s5503_s2 + $0x138] sm:$0xff]   ;;  %v4531_v36 = vld [vmem:[%s5503_s2 + $0x40] sm:$0xff]   ;;  %s3881_s27 = sshll.u32 %s5513_s22, 6 }
   0xf   : > { %s4759_s8 = scalar_lea.vmem %s5501_s0, %s3880_s29  ;;  %4227 = vmatpush3.bf16.msra.mxu0 %v4497_v2  ;;  %v4529_v33 = vld [vmem:[%s5503_s2 + $0xf8] sm:$0xff]   ;;  %v4527_v35 = vld [vmem:[%s5503_s2 + $0x170] sm:$0xff]   ;;  %v4863_v38 = vld [vmem:[%s5503_s2 + $0x80] sm:$0xff]   ;;  %s5488_s30 = scalar_lea.vmem %s5507_s6, %s3881_s27 }
  0x10   : > { %v4503_v4 = vld [vmem:[%s4759_s8] sm:$0xff]   ;;  %4228 = vmatprep.subr.bf16.mxu0 %v4498_v3  ;;  %v4504_v12 = vld [vmem:[%s4759_s8 + $0x8] sm:$0xff]   ;;  %v4505_v13 = vld [vmem:[%s4759_s8 + $0x10] sm:$0xff]  }
  0x11   : > { %4238 = vmatprep.mubr.bf16.mxu0 %v4503_v4  ;;  %v4506_v14 = vld [vmem:[%s4759_s8 + $0x18] sm:$0xff]   ;;  %3915 = vmatpush3.bf16.msra.mxu1 %v4514_v19  ;;  %v4869_v39 = vld [vmem:[%s5505_s4] ss:$0 sm:$0xff]  ;;  %vm4877_vm4 = vmand %vm563_vm0, %vm564_vm1 }
  0x12   : > { %3916 = vmatprep.subr.bf16.mxu1 %v4516_v21  ;;  %v4530_v37 = vld [vmem:[%s5503_s2 + $0x178] sm:$0xff]   ;;  %vm4883_vm5 = vmand %vm528_vm2, %vm529_vm3  ;;  %v4631_v1 = vld [vmem:[%s5504_s3 + $0x68] sm:$0xff]  }
  0x13   : > { %4229 = vmatpush3.bf16.msra.mxu0 %v4498_v3  ;;  %v4632_v7 = vld [vmem:[%s5504_s3 + $0x98] sm:$0xff]  }
  0x14   : > { %4230 = vmatprep.subr.bf16.mxu0 %v4499_v5 }
  0x15   : > { %3917 = vmatpush3.bf16.msra.mxu1 %v4517_v22 }
  0x16   : > { %3918 = vmatprep.subr.bf16.mxu1 %v4519_v23 }
  0x17   : > { %4231 = vmatpush3.bf16.msra.mxu0 %v4499_v5 }
  0x18   : > { %4232 = vmatprep.subr.bf16.mxu0 %v4500_v8 }
  0x19   : > { %3919 = vmatpush3.bf16.msra.mxu1 %v4520_v25 }
  0x1a   : > { %3920 = vmatprep.subr.bf16.mxu1 %v4522_v26 }
  0x1b   : > { %4233 = vmatpush3.bf16.msra.mxu0 %v4500_v8 }
  0x1c   : > { %4234 = vmatprep.subr.bf16.mxu0 %v4501_v9 }
  0x1d   : > { %3921 = vmatpush3.bf16.msra.mxu1 %v4523_v27 }
  0x1e   : > { %3922 = vmatprep.subr.bf16.mxu1 %v4525_v29 }
  0x1f   : > { %4235 = vmatpush3.bf16.msra.mxu0 %v4501_v9 }
  0x20   : > { %4236 = vmatprep.subr.bf16.mxu0 %v4502_v10 }
  0x21   : > { %3923 = vmatpush3.bf16.msra.mxu1 %v4526_v30 }
  0x22   : > { %3924 = vmatprep.subr.bf16.mxu1 %v4528_v32 }
  0x23   : > { %4237 = vmatpush3.bf16.msra.mxu0 %v4502_v10 }
  0x24   : > { %4246 = vmatprep.subr.bf16.mxu0 %v4509_v11 }
  0x25   : > { %3925 = vmatpush3.bf16.msra.mxu1 %v4529_v33 }
  0x26   : > { %4239 = vmatmul.mubr.bf16.vlgmr.msra.gmra.mrb[0].mxu0 %v4504_v12  ;;  %3962 = vmatprep.subr.bf16.mxu1 %v4531_v36 }
  0x27   : > { %4242 = vmatprep.mubr.bf16.mxu0 %v4505_v13  ;;  %4247 = vmatpush3.bf16.msra.mxu0 %v4509_v11 }
  0x28   : > { %4248 = vmatprep.subr.bf16.mxu0 %v4512_v18 }
  0x2b   : > { %4249 = vmatpush3.bf16.msra.mxu0 %v4512_v18 }
  0x2c   : > { %4250 = vmatprep.subr.bf16.mxu0 %v4515_v20 }
  0x2e   : > { %4243 = vmatmul.mubr.bf16.gmra.mrb[4].mxu0 %v4506_v14 }
  0x2f   : > { %4251 = vmatpush3.bf16.msra.mxu0 %v4515_v20 }
  0x30   : > { %4252 = vmatprep.subr.bf16.mxu0 %v4518_v24 }
  0x33   : > { %4253 = vmatpush3.bf16.msra.mxu0 %v4518_v24 }
  0x34   : > { %4254 = vmatprep.subr.bf16.mxu0 %v4521_v28 }
  0x37   : > { %4255 = vmatpush3.bf16.msra.mxu0 %v4521_v28 }
  0x38   : > { %4256 = vmatprep.subr.bf16.mxu0 %v4524_v31 }
  0x3b   : > { %4257 = vmatpush3.bf16.msra.mxu0 %v4524_v31 }
  0x3c   : > { %4258 = vmatprep.subr.bf16.mxu0 %v4527_v35 }
  0x3f   : > { %4259 = vmatpush3.bf16.msra.mxu0 %v4527_v35 }
  0x40   : > { %4260 = vmatprep.subr.bf16.mxu0 %v4530_v37 }
  0x43   : > { %4261 = vmatpush3.bf16.msra.mxu0 %v4530_v37 }
  0x44   : > { %4270 = vmatprep.subr.bf16.mxu0 %v4863_v38 }
  0xf9   : > { %v4240_v40 = vpop.f32.mrb[0].mxu0 }
  0xfa   : > { %v410_v41 = vadd.f32 %v4240_v40, %v4869_v39  ;;  %v401_v42 = vpop.f32.mrb[1].mxu0 }
  0xfb   : > { %v402_v43 = vadd.f32 %v4869_v39, %v401_v42  ;;  %v4241_v44 = vpop.f32.mrb[2].mxu0 }
  0xfc   : > { %v434_v45 = vmax.f32 %v410_v41, 0.0  ;;  %v413_v46 = vadd.f32 %v4241_v44, %v4869_v39  ;;  %v404_v47 = vpop.f32.mrb[3].mxu0 }
  0xfd   : > { %v432_v48 = vmax.f32 %v402_v43, 0.0  ;;  %v405_v49 = vadd.f32 %v4869_v39, %v404_v47 }
  0xfe   : > { %v3884_v50 = vpack.c.bf16 %v434_v45, %v434_v45  ;;  %v435_v51 = vmax.f32 %v413_v46, 0.0 }
  0xff   : > { %v3882_v52 = vpack.c.bf16 %v432_v48, %v432_v48  ;;  %v433_v53 = vmax.f32 %v405_v49, 0.0 }
 0x100   : > { %v479_v54 = vshrl.u32 %v3884_v50, 16  ;;  %v482_v55 = vshll.u32 %v3884_v50, 16  ;;  %v441_v56 = vpack.c.bf16 %v435_v51, %v434_v45  ;;  %v3885_v57 = vpack.c.bf16 %v435_v51, %v435_v51 }
 0x101   : > { %v465_v58 = vshrl.u32 %v3882_v52, 16  ;;  %v468_v59 = vshll.u32 %v3882_v52, 16  ;;  %v440_v60 = vpack.c.bf16 %v433_v53, %v432_v48  ;;  %v3883_v61 = vpack.c.bf16 %v433_v53, %v433_v53  ;;  %v4244_v62 = vpop.f32.mrb[4].mxu0 }
 0x102   : > { %v481_v63 = vrot.slane %v479_v54, 7  ;;  %v543_v0 = vrot.slane %v482_v55, 1  ;;  %v486_v2 = vshrl.u32 %v3885_v57, 16  ;;  %v489_v3 = vshll.u32 %v3885_v57, 16  ;;  %v417_v4 = vpop.f32.mrb[5].mxu0  ;;  %v4536_v57 = vld [vmem:[%s5503_s2 + $0x48] sm:$0xff]  }
 0x103   : > { %v467_v5 = vrot.slane %v465_v58, 7  ;;  %v539_v6 = vrot.slane %v468_v59, 1  ;;  %v472_v8 = vshrl.u32 %v3883_v61, 16  ;;  %v475_v9 = vshll.u32 %v3883_v61, 16  ;;  %v4245_v10 = vpop.f32.mrb[6].mxu0 }
 0x104   : > { %v484_v11 = vor.u32 %v482_v55, %v481_v63  ;;  %v544_v12 = vor.u32 %v543_v0, %v479_v54  ;;  %v488_v13 = vrot.slane %v486_v2, 7  ;;  %v545_v14 = vrot.slane %v489_v3, 1  ;;  %v420_v15 = vpop.f32.mrb[7].mxu0  ;;  %v4533_v54 = vld [vmem:[%s5503_s2] sm:$0xff]  }
 0x105   : > { %v470_v16 = vor.u32 %v468_v59, %v467_v5  ;;  %v540_v17 = vor.u32 %v539_v6, %v465_v58  ;;  %v474_v18 = vrot.slane %v472_v8, 7  ;;  %v541_v19 = vrot.slane %v475_v9, 1 }
 0x106   : > { %v568_v20 = vsel %vm4877_vm4, %v544_v12, 0  ;;  %v491_v21 = vor.u32 %v489_v3, %v488_v13  ;;  %v4891_v22 = vsel %vm4883_vm5, 0, %v484_v11  ;;  %v546_v23 = vor.u32 %v545_v14, %v486_v2 }
 0x107   : > { %v3427_v24 = vcombine.low %v568_v20, %v568_v20  ;;  %v566_v25 = vsel %vm4877_vm4, %v540_v17, 0  ;;  %v4896_v26 = vcombine.low %v4891_v22, %v441_v56  ;;  %v477_v27 = vor.u32 %v475_v9, %v474_v18  ;;  %v4541_v18 = vld [vmem:[%s5503_s2 + $0x10] sm:$0xff]  }
 0x108   : > { %v3422_v28 = vcombine.low %v566_v25, %v566_v25  ;;  %v534_v29 = vsel %vm4883_vm5, 0, %v491_v21  ;;  %v569_v30 = vsel %vm4877_vm4, %v546_v23, 0  ;;  %v4904_v31 = vsel %vm4883_vm5, 0, %v470_v16  ;;  %v4545_v25 = vld [vmem:[%s5503_s2 + $0x58] sm:$0xff]  }
 0x109   : > { %644 = vst [vmem:[#allocation2 + $0x2c] sm:$0xf] %v3427_v24  ;;  %v4907_v32 = vsel %vm563_vm0, %v534_v29, %v441_v56  ;;  %v3430_v33 = vcombine.low %v569_v30, %v569_v30  ;;  %v532_v35 = vsel %vm4883_vm5, 0, %v477_v27  ;;  %v542_v36 = vor.u32 %v541_v19, %v472_v8  ;;  %v4538_v24 = vld [vmem:[%s5503_s2 + $0x88] sm:$0xff]  }
 0x10a   : > { %640 = vst [vmem:[#allocation2 + $0x14] sm:$0xf] %v3422_v28  ;;  %v4912_v37 = vcombine.low %v4904_v31, %v440_v60  ;;  %v4915_v40 = vsel %vm563_vm0, %v532_v35, %v440_v60  ;;  %v426_v41 = vadd.f32 %v4244_v62, %v4869_v39  ;;  %v418_v42 = vadd.f32 %v4869_v39, %v417_v4  ;;  %v4537_v62 = vld [vmem:[%s5503_s2 + $0x8] sm:$0xff]   ;;  %v4539_v4 = vld [vmem:[%s5503_s2 + $0x50] sm:$0xff]  }
 0x10b   : > { %646 = vst [vmem:[#allocation2 + $0x38] sm:$0xf] %v3430_v33  ;;  %v567_v43 = vsel %vm4877_vm4, %v542_v36, 0  ;;  %v429_v44 = vadd.f32 %v4245_v10, %v4869_v39  ;;  %v421_v45 = vadd.f32 %v4869_v39, %v420_v15  ;;  %v3493_v46 = vcombine.high %v4896_v26, %v4907_v32 }
 0x10c   : > { %v3425_v47 = vcombine.low %v567_v43, %v567_v43  ;;  %v438_v48 = vmax.f32 %v426_v41, 0.0  ;;  %v436_v49 = vmax.f32 %v418_v42, 0.0  ;;  %v4676_v50 = vcombine.low %v4904_v31, %v4915_v40 }
 0x10d   : > { %v439_v51 = vmax.f32 %v429_v44, 0.0  ;;  %v437_v52 = vmax.f32 %v421_v45, 0.0  ;;  %v3490_v53 = vcombine.high %v4912_v37, %v4915_v40  ;;  %v4677_v39 = vcombine.low %v4891_v22, %v4907_v32 }
 0x10e   : > { %642 = vst [vmem:[#allocation2 + $0x20] sm:$0xf] %v3425_v47  ;;  %v3888_v55 = vpack.c.bf16 %v438_v48, %v438_v48  ;;  %v3886_v56 = vpack.c.bf16 %v436_v49, %v436_v49 }
 0x10f   : > { %v443_v58 = vpack.c.bf16 %v439_v51, %v438_v48  ;;  %v3889_v59 = vpack.c.bf16 %v439_v51, %v439_v51  ;;  %v442_v60 = vpack.c.bf16 %v437_v52, %v436_v49  ;;  %v3887_v61 = vpack.c.bf16 %v437_v52, %v437_v52  ;;  %1024 = vmatprep.mubr.bf16.mxu1 %v3490_v53 }
 0x110   : > { %v507_v63 = vshrl.u32 %v3888_v55, 16  ;;  %v510_v0 = vshll.u32 %v3888_v55, 16  ;;  %v493_v2 = vshrl.u32 %v3886_v56, 16  ;;  %v496_v3 = vshll.u32 %v3886_v56, 16  ;;  %1025 = vmatmul.mubr.bf16.vlgmr.msra.gmra.mrb[0].mxu1 %v4676_v50 }
 0x111   : > { %v514_v5 = vshrl.u32 %v3889_v59, 16  ;;  %v517_v6 = vshll.u32 %v3889_v59, 16  ;;  %v500_v8 = vshrl.u32 %v3887_v61, 16  ;;  %v503_v9 = vshll.u32 %v3887_v61, 16  ;;  %3963 = vmatpush3.bf16.msra.mxu1 %v4533_v54  ;;  %1032 = vmatprep.mubr.bf16.mxu1 %v3493_v46 }
 0x112   : > { %v509_v10 = vrot.slane %v507_v63, 7  ;;  %v551_v11 = vrot.slane %v510_v0, 1  ;;  %v495_v12 = vrot.slane %v493_v2, 7  ;;  %v547_v13 = vrot.slane %v496_v3, 1  ;;  %3964 = vmatprep.subr.bf16.mxu1 %v4536_v57  ;;  %v4535_v43 = vld [vmem:[#allocation2 + $0x2c] ss:$12 sps:$4 sm:$0xff]  }
 0x113   : > { %v516_v14 = vrot.slane %v514_v5, 7  ;;  %v553_v15 = vrot.slane %v517_v6, 1  ;;  %v502_v16 = vrot.slane %v500_v8, 7  ;;  %v549_v17 = vrot.slane %v503_v9, 1  ;;  %v4546_v57 = vld [vmem:[%s5503_s2 + $0x18] sm:$0xff]  }
 0x114   : > { %v512_v19 = vor.u32 %v510_v0, %v509_v10  ;;  %v552_v20 = vor.u32 %v551_v11, %v507_v63  ;;  %v498_v21 = vor.u32 %v496_v3, %v495_v12  ;;  %v548_v23 = vor.u32 %v547_v13, %v493_v2  ;;  %v4550_v3 = vld [vmem:[%s5503_s2 + $0xa0] sm:$0xff]   ;;  %v4553_v10 = vld [vmem:[%s5503_s2 + $0xa8] sm:$0xff]   ;;  %v4555_v11 = vld [vmem:[%s5503_s2 + $0x30] sm:$0xff]  }
 0x115   : > { %v519_v27 = vor.u32 %v517_v6, %v516_v14  ;;  %v554_v28 = vor.u32 %v553_v15, %v514_v5  ;;  %v505_v29 = vor.u32 %v503_v9, %v502_v16  ;;  %v550_v30 = vor.u32 %v549_v17, %v500_v8  ;;  %v4532_v33 = vld [vmem:[#allocation2 + $0x14] ss:$12 sps:$4 sm:$0xff]   ;;  %3965 = vmatpush3.bf16.msra.mxu1 %v4537_v62  ;;  %v4557_v13 = vld [vmem:[%s5503_s2 + $0x78] sm:$0xff]  }
 0x116   : > { %v572_v35 = vsel %vm4877_vm4, %v552_v20, 0  ;;  %v570_v36 = vsel %vm4877_vm4, %v548_v23, 0  ;;  %v4958_v41 = vsel %vm4883_vm5, 0, %v512_v19  ;;  %v535_v42 = vsel %vm4883_vm5, 0, %v498_v21  ;;  %3966 = vmatprep.subr.bf16.mxu1 %v4539_v4  ;;  %4262 = vmatprep.mubr.bf16.mxu0 %v4532_v33  ;;  %v4552_v4 = vld [vmem:[%s5503_s2 + $0x28] sm:$0xff]   ;;  %v4554_v8 = vld [vmem:[%s5503_s2 + $0x70] sm:$0xff]  }
 0x117   : > { %v3437_v44 = vcombine.low %v572_v35, %v572_v35  ;;  %v3432_v45 = vcombine.low %v570_v36, %v570_v36  ;;  %v538_v46 = vsel %vm4883_vm5, 0, %v519_v27  ;;  %v573_v47 = vsel %vm4877_vm4, %v554_v28, 0  ;;  %4263 = vmatmul.mubr.bf16.vlgmr.msra.gmra.mrb[8].mxu0 %v4535_v43  ;;  %v4544_v9 = vld [vmem:[#allocation2 + $0x8] ss:$12 sps:$4 sm:$0xff]   ;;  %v4558_v15 = vld [vmem:[%s5503_s2 + $0x38] sm:$0xff]   ;;  %v4562_v17 = vld [vmem:[%s5503_s2 + $0x180] sm:$0xff]  }
 0x118   : > { %v3436_v48 = vcombine.low %v4958_v41, %v443_v58  ;;  %v4968_v49 = vsel %vm563_vm0, %v538_v46, %v443_v58  ;;  %v3440_v50 = vcombine.low %v573_v47, %v573_v47  ;;  %v536_v51 = vsel %vm4883_vm5, 0, %v505_v29  ;;  %1033 = vmatmul.mubr.bf16.gmra.mrb[4].mxu1 %v4677_v39  ;;  %4271 = vmatpush3.bf16.msra.mxu0 %v4863_v38  ;;  %v4542_v39 = vld [vmem:[%s5503_s2 + $0x90] sm:$0xff]   ;;  %v4559_v16 = vld [vmem:[%s5503_s2 + $0xb8] sm:$0xff]   ;;  %v4565_v19 = vld [vmem:[%s5503_s2 + $0x1c8] sm:$0xff]  }
 0x119   : > { %652 = vst [vmem:[#allocation2 + $0x5c] sm:$0xf] %v3437_v44  ;;  %648 = vst [vmem:[#allocation2 + $0x44] sm:$0xf] %v3432_v45  ;;  %v571_v52 = vsel %vm4877_vm4, %v550_v30, 0  ;;  %v3431_v53 = vcombine.low %v535_v42, %v442_v60  ;;  %v3434_v54 = vsel %vm563_vm0, %v536_v51, %v442_v60  ;;  %3967 = vmatpush3.bf16.msra.mxu1 %v4541_v18  ;;  %4272 = vmatprep.subr.bf16.mxu0 %v4538_v24  ;;  %v4556_v14 = vld [vmem:[%s5503_s2 + $0xb0] sm:$0xff]  }
 0x11a   : > { %v4978_v55 = vcombine.high %v4915_v40, %v4896_v26  ;;  %654 = vst [vmem:[#allocation2 + $0x68] sm:$0xf] %v3440_v50  ;;  %v3435_v56 = vcombine.low %v571_v52, %v571_v52  ;;  %3968 = vmatprep.subr.bf16.mxu1 %v4545_v25  ;;  %v3499_v58 = vcombine.high %v3436_v48, %v4968_v49  ;;  %v4548_v26 = vld [vmem:[%s5503_s2 + $0x60] sm:$0xff]   ;;  %v4566_v21 = vld [vmem:[%s5503_s2 + $0x188] sm:$0xff]   ;;  %v4570_v27 = vld [vmem:[%s5503_s2 + $0x190] sm:$0xff]  }
 0x11b   : > { %v4678_v38 = vcombine.low %v4958_v41, %v4968_v49  ;;  %v3496_v59 = vcombine.high %v3431_v53, %v3434_v54  ;;  %v4679_v60 = vcombine.low %v535_v42, %v3434_v54  ;;  %v4994_v61 = vcombine.low %v4915_v40, %v4891_v22  ;;  %v4547_v22 = vld [vmem:[%s5503_s2 + $0x98] sm:$0xff]   ;;  %v4549_v40 = vld [vmem:[%s5503_s2 + $0x20] sm:$0xff]   ;;  %v4571_v29 = vld [vmem:[%s5503_s2 + $0x210] sm:$0xff]  }
 0x11c   : > { %v4997_v62 = vcombine.high %v4907_v32, %v3431_v53  ;;  %650 = vst [vmem:[#allocation2 + $0x50] sm:$0xf] %v3435_v56  ;;  %v5000_v63 = vcombine.low %v4907_v32, %v535_v42  ;;  %v5002_v0 = vcombine.high %v3434_v54, %v3436_v48  ;;  %v5005_v2 = vcombine.low %v3434_v54, %v4958_v41  ;;  %v4551_v32 = vld [vmem:[%s5503_s2 + $0x68] sm:$0xff]   ;;  %v4563_v20 = vld [vmem:[%s5503_s2 + $0x200] sm:$0xff]   ;;  %v4573_v28 = vld [vmem:[%s5503_s2 + $0x1d8] sm:$0xff]  }
 0x11d   : > { %4273 = vmatpush3.bf16.msra.mxu0 %v4538_v24  ;;  %1040 = vmatprep.mubr.bf16.mxu1 %v3496_v59  ;;  %v3526_v12 = vcombine.high %v4700_v34, %v4912_v37  ;;  %v4560_v37 = vld [vmem:[%s5503_s2 + $0x1c0] sm:$0xff]   ;;  %v4683_v18 = vcombine.low %v4700_v34, %v4904_v31  ;;  %v4568_v31 = vld [vmem:[%s5503_s2 + $0x1d0] sm:$0xff]   ;;  %v4567_v24 = vld [vmem:[%s5503_s2 + $0x208] sm:$0xff]  }
 0x11e   : > { %4274 = vmatprep.subr.bf16.mxu0 %v4542_v39  ;;  %3969 = vmatpush3.bf16.msra.mxu1 %v4546_v57  ;;  %v4561_v23 = vld [vmem:[#allocation2 + $0x20] ss:$12 sps:$4 sm:$0xff]   ;;  %v4574_v30 = vld [vmem:[%s5503_s2 + $0x198] sm:$0xff]   ;;  %v4582_v46 = vld [vmem:[%s5503_s2 + $0x1f0] sm:$0xff]   ;;  %v3618_v57 = vcombine.low %v4968_v49, %v4700_v34 }
 0x11f   : > { %3970 = vmatprep.subr.bf16.mxu1 %v4548_v26  ;;  %v4576_v33 = vld [vmem:[%s5503_s2 + $0x1e0] sm:$0xff]   ;;  %v4575_v36 = vld [vmem:[%s5503_s2 + $0x218] sm:$0xff]   ;;  %v4579_v43 = vld [vmem:[%s5503_s2 + $0x1e8] sm:$0xff]  }
 0x120   : > { %1041 = vmatmul.mubr.bf16.gmra.mrb[8].mxu1 %v4679_v60  ;;  %v4564_v25 = vld [vmem:[#allocation2 + $0x38] ss:$12 sps:$4 sm:$0xff]   ;;  %v4572_v41 = vld [vmem:[#allocation2 + $0x20] ss:$12 sps:$4 sm:$0xff]   ;;  %v4583_v48 = vld [vmem:[%s5503_s2 + $0x1b0] sm:$0xff]  }
 0x121   : > { %4275 = vmatpush3.bf16.msra.mxu0 %v4542_v39  ;;  %1048 = vmatprep.mubr.bf16.mxu1 %v3499_v58  ;;  %v4543_v5 = vld [vmem:[#allocation2 + $0x5c] ss:$12 sps:$4 sm:$0xff]   ;;  %v4577_v42 = vld [vmem:[%s5503_s2 + $0x1a0] sm:$0xff]   ;;  %v4584_v51 = vld [vmem:[%s5503_s2 + $0x230] sm:$0xff]   ;;  %v3619_v39 = vcombine.high %v4968_v49, %v4700_v34 }
 0x122   : > { %4276 = vmatprep.subr.bf16.mxu0 %v4547_v22  ;;  %3971 = vmatpush3.bf16.msra.mxu1 %v4549_v40  ;;  %v4578_v44 = vld [vmem:[%s5503_s2 + $0x220] sm:$0xff]   ;;  %v4580_v45 = vld [vmem:[%s5503_s2 + $0x1a8] sm:$0xff]   ;;  %v4585_v50 = vld [vmem:[%s5503_s2 + $0x1f8] sm:$0xff]  }
 0x123   : > { %v4540_v6 = vld [vmem:[#allocation2 + $0x44] ss:$12 sps:$4 sm:$0xff]   ;;  %3972 = vmatprep.subr.bf16.mxu1 %v4551_v32  ;;  %v4581_v47 = vld [vmem:[%s5503_s2 + $0x228] sm:$0xff]   ;;  %v4586_v52 = vld [vmem:[%s5503_s2 + $0x1b8] sm:$0xff]  }
 0x124   : > { %4266 = vmatprep.mubr.bf16.mxu0 %v4540_v6  ;;  %v4569_v35 = vld [vmem:[#allocation2 + $0x50] ss:$12 sps:$4 sm:$0xff]   ;;  %v4588_v54 = vld [vmem:[#allocation2 + $0x38] ss:$12 sps:$4 sm:$0xff]   ;;  %v4590_v56 = vld [vmem:[#allocation2 + $0x68] ss:$12 sps:$4 sm:$0xff]  }
 0x125   : > { %4277 = vmatpush3.bf16.msra.mxu0 %v4547_v22  ;;  %v4587_v53 = vld [vmem:[%s5503_s2 + $0x238] sm:$0xff]   ;;  %v4591_v58 = vld [vmem:[%s5504_s3 + $0x100] sm:$0xff]   ;;  %v4593_v59 = vld [vmem:[%s5504_s3 + $0x108] sm:$0xff]  }
 0x126   : > { %4267 = vmatmul.mubr.bf16.gmra.mrb[12].mxu0 %v4543_v5  ;;  %4278 = vmatprep.subr.bf16.mxu0 %v4550_v3  ;;  %v4594_v26 = vld [vmem:[%s5504_s3 + $0xc8] sm:$0xff]   ;;  %v4595_v34 = vld [vmem:[%s5504_s3 + $0x110] sm:$0xff]   ;;  %v4596_v60 = vld [vmem:[%s5504_s3 + $0x140] sm:$0xff]  }
 0x127   : > { %4286 = vmatprep.mubr.bf16.mxu0 %v4544_v9  ;;  %3973 = vmatpush3.bf16.msra.mxu1 %v4552_v4  ;;  %v4597_v49 = vld [vmem:[%s5504_s3 + $0xd0] sm:$0xff]   ;;  %v4604_v40 = vld [vmem:[%s5504_s3 + $0x128] sm:$0xff]   ;;  %v4608_v6 = vld [vmem:[%s5504_s3 + $0x160] sm:$0xff]  }
 0x128   : > { %3974 = vmatprep.subr.bf16.mxu1 %v4554_v8  ;;  %1049 = vmatmul.mubr.bf16.gmra.mrb[12].mxu1 %v4678_v38  ;;  %v4592_v38 = vld [vmem:[%s5504_s3 + $0xc0] sm:$0xff]   ;;  %v4602_v22 = vld [vmem:[%s5504_s3 + $0x150] sm:$0xff]   ;;  %v4606_v32 = vld [vmem:[%s5504_s3 + $0xe8] sm:$0xff]  }
 0x129   : > { %4279 = vmatpush3.bf16.msra.mxu0 %v4550_v3  ;;  %1362 = vmatprep.mubr.bf16.mxu1 %v3526_v12  ;;  %v4605_v3 = vld [vmem:[%s5504_s3 + $0x158] sm:$0xff]   ;;  %v4607_v4 = vld [vmem:[%s5504_s3 + $0x130] sm:$0xff]  }
 0x12a   : > { %4280 = vmatprep.subr.bf16.mxu0 %v4553_v10  ;;  %v4609_v5 = vld [vmem:[%s5504_s3 + $0xf0] sm:$0xff]   ;;  %v4610_v8 = vld [vmem:[%s5504_s3 + $0x138] sm:$0xff]  }
 0x12b   : > { %3975 = vmatpush3.bf16.msra.mxu1 %v4555_v11  ;;  %v4612_v9 = vld [vmem:[%s5504_s3 + $0xf8] sm:$0xff]   ;;  %v4614_v11 = vld [vmem:[%s5504_s3 + $0x40] sm:$0xff]   ;;  %v4613_v12 = vld [vmem:[%s5504_s3 + $0x170] sm:$0xff]  }
 0x12c   : > { %3976 = vmatprep.subr.bf16.mxu1 %v4557_v13  ;;  %v4617_v13 = vld [vmem:[%s5504_s3 + $0x178] sm:$0xff]  }
 0x12d   : > { %4281 = vmatpush3.bf16.msra.mxu0 %v4553_v10  ;;  %v4611_v10 = vld [vmem:[%s5504_s3 + $0x168] sm:$0xff]  }
 0x12e   : > { %4282 = vmatprep.subr.bf16.mxu0 %v4556_v14 }
 0x12f   : > { %3977 = vmatpush3.bf16.msra.mxu1 %v4558_v15 }
 0x130   : > { %4014 = vmatprep.subr.bf16.mxu1 %v4560_v37 }
 0x131   : > { %4283 = vmatpush3.bf16.msra.mxu0 %v4556_v14  ;;  %v5213_v14 = vld [vmem:[%s5504_s3 + $0x80] sm:$0xff]  }
 0x132   : > { %4284 = vmatprep.subr.bf16.mxu0 %v4559_v16  ;;  %1363 = vmatmul.mubr.bf16.vlgmr.msra.gmra.mrb[16].mxu1 %v4683_v18 }
 0x133   : > { %4015 = vmatpush3.bf16.msra.mxu1 %v4562_v17  ;;  %1370 = vmatprep.mubr.bf16.mxu1 %v4978_v55 }
 0x134   : > { %4016 = vmatprep.subr.bf16.mxu1 %v4565_v19 }
 0x135   : > { %4285 = vmatpush3.bf16.msra.mxu0 %v4559_v16 }
 0x136   : > { %4294 = vmatprep.subr.bf16.mxu0 %v4563_v20 }
 0x137   : > { %4017 = vmatpush3.bf16.msra.mxu1 %v4566_v21 }
 0x138   : > { %4287 = vmatmul.mubr.bf16.vlgmr.msra.gmra.mrb[8].mxu0 %v4561_v23  ;;  %4018 = vmatprep.subr.bf16.mxu1 %v4568_v31 }
 0x139   : > { %4290 = vmatprep.mubr.bf16.mxu0 %v4564_v25  ;;  %4295 = vmatpush3.bf16.msra.mxu0 %v4563_v20 }
 0x13a   : > { %4296 = vmatprep.subr.bf16.mxu0 %v4567_v24  ;;  %1371 = vmatmul.mubr.bf16.gmra.mrb[20].mxu1 %v4994_v61 }
 0x13b   : > { %4019 = vmatpush3.bf16.msra.mxu1 %v4570_v27  ;;  %1378 = vmatprep.mubr.bf16.mxu1 %v4997_v62 }
 0x13c   : > { %4020 = vmatprep.subr.bf16.mxu1 %v4573_v28 }
 0x13d   : > { %4297 = vmatpush3.bf16.msra.mxu0 %v4567_v24 }
 0x13e   : > { %4298 = vmatprep.subr.bf16.mxu0 %v4571_v29 }
 0x13f   : > { %4021 = vmatpush3.bf16.msra.mxu1 %v4574_v30 }
 0x140   : > { %4291 = vmatmul.mubr.bf16.gmra.mrb[12].mxu0 %v4569_v35  ;;  %4022 = vmatprep.subr.bf16.mxu1 %v4576_v33 }
 0x141   : > { %4299 = vmatpush3.bf16.msra.mxu0 %v4571_v29  ;;  %4310 = vmatprep.mubr.bf16.mxu0 %v4572_v41 }
 0x142   : > { %4300 = vmatprep.subr.bf16.mxu0 %v4575_v36  ;;  %1379 = vmatmul.mubr.bf16.gmra.mrb[24].mxu1 %v5000_v63 }
 0x143   : > { %4023 = vmatpush3.bf16.msra.mxu1 %v4577_v42  ;;  %1386 = vmatprep.mubr.bf16.mxu1 %v5002_v0 }
 0x144   : > { %4024 = vmatprep.subr.bf16.mxu1 %v4579_v43 }
 0x145   : > { %4301 = vmatpush3.bf16.msra.mxu0 %v4575_v36 }
 0x146   : > { %4302 = vmatprep.subr.bf16.mxu0 %v4578_v44 }
 0x147   : > { %4025 = vmatpush3.bf16.msra.mxu1 %v4580_v45 }
 0x148   : > { %4026 = vmatprep.subr.bf16.mxu1 %v4582_v46 }
 0x149   : > { %4303 = vmatpush3.bf16.msra.mxu0 %v4578_v44 }
 0x14a   : > { %4304 = vmatprep.subr.bf16.mxu0 %v4581_v47  ;;  %1387 = vmatmul.mubr.bf16.gmra.mrb[28].mxu1 %v5005_v2 }
 0x14b   : > { %4027 = vmatpush3.bf16.msra.mxu1 %v4583_v48  ;;  %1766 = vmatprep.mubr.bf16.mxu1 %v4978_v55  ;;  %v4589_v55 = vld [vmem:[#allocation2 + $0x50] ss:$12 sps:$4 sm:$0xff]  }
 0x14c   : > { %4028 = vmatprep.subr.bf16.mxu1 %v4585_v50 }
 0x14d   : > { %4305 = vmatpush3.bf16.msra.mxu0 %v4581_v47 }
 0x14e   : > { %4306 = vmatprep.subr.bf16.mxu0 %v4584_v51 }
 0x14f   : > { %4029 = vmatpush3.bf16.msra.mxu1 %v4586_v52 }
 0x150   : > { %4066 = vmatprep.subr.bf16.mxu1 %v4591_v58 }
 0x151   : > { %4307 = vmatpush3.bf16.msra.mxu0 %v4584_v51 }
 0x152   : > { %4308 = vmatprep.subr.bf16.mxu0 %v4587_v53  ;;  %1767 = vmatmul.mubr.bf16.vlgmr.msra.gmra.mrb[32].mxu1 %v4994_v61  ;;  %v4598_v61 = vld [vmem:[%s5504_s3 + $0x118] sm:$0xff]  }
 0x153   : > { %1774 = vmatprep.mubr.bf16.mxu1 %v4997_v62  ;;  %4067 = vmatpush3.bf16.msra.mxu1 %v4592_v38  ;;  %v4600_v62 = vld [vmem:[%s5504_s3 + $0xd8] sm:$0xff]  }
 0x154   : > { %4068 = vmatprep.subr.bf16.mxu1 %v4593_v59 }
 0x155   : > { %4309 = vmatpush3.bf16.msra.mxu0 %v4587_v53 }
 0x156   : > { %4318 = vmatprep.subr.bf16.mxu0 %v4596_v60 }
 0x157   : > { %4069 = vmatpush3.bf16.msra.mxu1 %v4594_v26 }
 0x158   : > { %4311 = vmatmul.mubr.bf16.vlgmr.msra.gmra.mrb[8].mxu0 %v4588_v54  ;;  %4070 = vmatprep.subr.bf16.mxu1 %v4595_v34 }
 0x159   : > { %4314 = vmatprep.mubr.bf16.mxu0 %v4589_v55  ;;  %4319 = vmatpush3.bf16.msra.mxu0 %v4596_v60 }
 0x15a   : > { %1775 = vmatmul.mubr.bf16.gmra.mrb[36].mxu1 %v5000_v63  ;;  %v4599_v63 = vld [vmem:[%s5504_s3 + $0x148] sm:$0xff]  }
 0x15b   : > { %1782 = vmatprep.mubr.bf16.mxu1 %v5002_v0  ;;  %4071 = vmatpush3.bf16.msra.mxu1 %v4597_v49  ;;  %v4601_v0 = vld [vmem:[%s5504_s3 + $0x120] sm:$0xff]  }
 0x15c   : > { %4072 = vmatprep.subr.bf16.mxu1 %v4598_v61  ;;  %4320 = vmatprep.subr.bf16.mxu0 %v4599_v63 }
 0x15d   : > { %4321 = vmatpush3.bf16.msra.mxu0 %v4599_v63 }
 0x15e   : > { %4322 = vmatprep.subr.bf16.mxu0 %v4602_v22 }
 0x15f   : > { %4073 = vmatpush3.bf16.msra.mxu1 %v4600_v62 }
 0x160   : > { %4315 = vmatmul.mubr.bf16.gmra.mrb[12].mxu0 %v4590_v56  ;;  %4074 = vmatprep.subr.bf16.mxu1 %v4601_v0 }
 0x161   : > { %4323 = vmatpush3.bf16.msra.mxu0 %v4602_v22 }
 0x162   : > { %1783 = vmatmul.mubr.bf16.gmra.mrb[40].mxu1 %v5005_v2  ;;  %v4603_v2 = vld [vmem:[%s5504_s3 + $0xe0] sm:$0xff]   ;;  %4324 = vmatprep.subr.bf16.mxu0 %v4605_v3 }
 0x163   : > { %1790 = vmatprep.mubr.bf16.mxu1 %v3619_v39  ;;  %4075 = vmatpush3.bf16.msra.mxu1 %v4603_v2 }
 0x164   : > { %4076 = vmatprep.subr.bf16.mxu1 %v4604_v40 }
 0x165   : > { %4325 = vmatpush3.bf16.msra.mxu0 %v4605_v3 }
 0x166   : > { %4326 = vmatprep.subr.bf16.mxu0 %v4608_v6 }
 0x167   : > { %4077 = vmatpush3.bf16.msra.mxu1 %v4606_v32 }
 0x168   : > { %4078 = vmatprep.subr.bf16.mxu1 %v4607_v4 }
 0x169   : > { %4327 = vmatpush3.bf16.msra.mxu0 %v4608_v6 }
 0x16a   : > { %1791 = vmatmul.mubr.bf16.gmra.mrb[44].mxu1 %v3618_v57  ;;  %4328 = vmatprep.subr.bf16.mxu0 %v4611_v10 }
 0x16b   : > { %4079 = vmatpush3.bf16.msra.mxu1 %v4609_v5 }
 0x16c   : > { %4080 = vmatprep.subr.bf16.mxu1 %v4610_v8 }
 0x16d   : > { %4329 = vmatpush3.bf16.msra.mxu0 %v4611_v10 }
 0x16e   : > { %4330 = vmatprep.subr.bf16.mxu0 %v4613_v12 }
 0x16f   : > { %4081 = vmatpush3.bf16.msra.mxu1 %v4612_v9 }
 0x170   : > { %4118 = vmatprep.subr.bf16.mxu1 %v4614_v11 }
 0x171   : > { %4331 = vmatpush3.bf16.msra.mxu0 %v4613_v12 }
 0x172   : > { %4332 = vmatprep.subr.bf16.mxu0 %v4617_v13 }
 0x175   : > { %4333 = vmatpush3.bf16.msra.mxu0 %v4617_v13 }
 0x176   : > { %4342 = vmatprep.subr.bf16.mxu0 %v5213_v14 }
 0x1e3   : > { %v3926_v15 = vpop.f32.mrb[0].mxu1 }
 0x1e4   : > { %v3927_v37 = vpop.f32.mrb[1].mxu1 }
 0x1e5   : > { %v3928_v16 = vadd.f32 %v3927_v37, %v3926_v15  ;;  %v3929_v17 = vpop.f32.mrb[2].mxu1 }
 0x1e6   : > { %v3930_v18 = vpop.f32.mrb[3].mxu1 }
 0x1e7   : > { %v3931_v19 = vadd.f32 %v3930_v18, %v3929_v17  ;;  %v5227_v18 = vld [vmem:[%s5506_s5] ss:$0 sm:$0xff] }
 0x1eb   : > { %v3932_v20 = vpop.f32.mrb[4].mxu1 }
 0x1ec   : > { %v3933_v21 = vpop.f32.mrb[5].mxu1 }
 0x1ed   : > { %v3934_v31 = vadd.f32 %v3933_v21, %v3932_v20  ;;  %v3935_v23 = vpop.f32.mrb[6].mxu1 }
 0x1ee   : > { %v3936_v24 = vpop.f32.mrb[7].mxu1 }
 0x1ef   : > { %v3937_v25 = vadd.f32 %v3936_v24, %v3935_v23 }
 0x1f3   : > { %v3938_v27 = vpop.f32.mrb[8].mxu1 }
 0x1f4   : > { %v3939_v28 = vpop.f32.mrb[9].mxu1 }
 0x1f5   : > { %v3940_v29 = vadd.f32 %v3939_v28, %v3938_v27  ;;  %v3941_v30 = vpop.f32.mrb[10].mxu1 }
 0x1f6   : > { %v3942_v33 = vpop.f32.mrb[11].mxu1 }
 0x1f7   : > { %v3943_v35 = vadd.f32 %v3942_v33, %v3941_v30 }
 0x1fb   : > { %v3944_v36 = vpop.f32.mrb[12].mxu1 }
 0x1fc   : > { %v3945_v41 = vpop.f32.mrb[13].mxu1 }
 0x1fd   : > { %v3946_v42 = vadd.f32 %v3945_v41, %v3944_v36  ;;  %v3947_v43 = vpop.f32.mrb[14].mxu1 }
 0x1fe   : > { %v3948_v44 = vpop.f32.mrb[15].mxu1 }
 0x1ff   : > { %v3949_v45 = vadd.f32 %v3948_v44, %v3947_v43 }
 0x205   : > { %v3978_v46 = vpop.f32.mrb[16].mxu1 }
 0x206   : > { %v3979_v47 = vpop.f32.mrb[17].mxu1 }
 0x207   : > { %v3980_v48 = vadd.f32 %v3979_v47, %v3978_v46  ;;  %v3981_v50 = vpop.f32.mrb[18].mxu1 }
 0x208   : > { %v3982_v51 = vpop.f32.mrb[19].mxu1 }
 0x209   : > { %v4409_v52 = vadd.f32 %v3980_v48, %v3928_v16  ;;  %v3983_v53 = vadd.f32 %v3982_v51, %v3981_v50 }
 0x20b   : > { %v4415_v54 = vadd.f32 %v3983_v53, %v3931_v19 }
 0x20d   : > { %v3984_v55 = vpop.f32.mrb[20].mxu1 }
 0x20e   : > { %v3985_v56 = vpop.f32.mrb[21].mxu1 }
 0x20f   : > { %v3986_v39 = vadd.f32 %v3985_v56, %v3984_v55  ;;  %v3987_v57 = vpop.f32.mrb[22].mxu1 }
 0x210   : > { %v3988_v58 = vpop.f32.mrb[23].mxu1 }
 0x211   : > { %v4406_v38 = vadd.f32 %v3986_v39, %v3934_v31  ;;  %v3989_v59 = vadd.f32 %v3988_v58, %v3987_v57 }
 0x213   : > { %v4412_v26 = vadd.f32 %v3989_v59, %v3937_v25 }
 0x215   : > { %v3990_v34 = vpop.f32.mrb[24].mxu1 }
 0x216   : > { %v3991_v49 = vpop.f32.mrb[25].mxu1 }
 0x217   : > { %v3992_v60 = vadd.f32 %v3991_v49, %v3990_v34  ;;  %v3993_v61 = vpop.f32.mrb[26].mxu1 }
 0x218   : > { %v3994_v62 = vpop.f32.mrb[27].mxu1 }
 0x219   : > { %v5216_v63 = vadd.f32 %v3992_v60, %v3940_v29  ;;  %v3995_v0 = vadd.f32 %v3994_v62, %v3993_v61 }
 0x21b   : > { %v5218_v2 = vadd.f32 %v3995_v0, %v3943_v35 }
 0x21d   : > { %v3996_v22 = vpop.f32.mrb[28].mxu1 }
 0x21e   : > { %v3997_v40 = vpop.f32.mrb[29].mxu1 }
 0x21f   : > { %v3998_v32 = vadd.f32 %v3997_v40, %v3996_v22  ;;  %v3999_v3 = vpop.f32.mrb[30].mxu1 }
 0x220   : > { %v4000_v4 = vpop.f32.mrb[31].mxu1 }
 0x221   : > { %v5220_v5 = vadd.f32 %v3998_v32, %v3946_v42  ;;  %v4001_v6 = vadd.f32 %v4000_v4, %v3999_v3 }
 0x223   : > { %v5222_v8 = vadd.f32 %v4001_v6, %v3949_v45 }
 0x225   : > { %v4030_v9 = vpop.f32.mrb[32].mxu1 }
 0x226   : > { %v4031_v10 = vpop.f32.mrb[33].mxu1 }
 0x227   : > { %v4032_v11 = vadd.f32 %v4031_v10, %v4030_v9  ;;  %v4033_v12 = vpop.f32.mrb[34].mxu1 }
 0x228   : > { %v4034_v13 = vpop.f32.mrb[35].mxu1 }
 0x229   : > { %v4410_v15 = vadd.f32 %v4409_v52, %v4032_v11  ;;  %v4035_v37 = vadd.f32 %v4034_v13, %v4033_v12 }
 0x22b   : > { %v4312_v16 = vpop.f32.mrb[8].mxu0  ;;  %v4416_v17 = vadd.f32 %v4415_v54, %v4035_v37 }
 0x22c   : > { %v1833_v19 = vpop.f32.mrb[9].mxu0 }
 0x22d   : > { %v4411_v20 = vadd.f32 %v4410_v15, %v1833_v19  ;;  %v4313_v21 = vpop.f32.mrb[10].mxu0  ;;  %v4036_v31 = vpop.f32.mrb[36].mxu1 }
 0x22e   : > { %v1836_v23 = vpop.f32.mrb[11].mxu0  ;;  %v4037_v24 = vpop.f32.mrb[37].mxu1 }
 0x22f   : > { %v1878_v25 = vadd.f32 %v4411_v20, %v5227_v18  ;;  %v4417_v27 = vadd.f32 %v4416_v17, %v1836_v23  ;;  %v4038_v28 = vadd.f32 %v4037_v24, %v4036_v31  ;;  %v4039_v29 = vpop.f32.mrb[38].mxu1 }
 0x230   : > { %v4040_v30 = vpop.f32.mrb[39].mxu1 }
 0x231   : > { %v1886_v33 = vmax.f32 %v1878_v25, 0.0  ;;  %v1879_v35 = vadd.f32 %v4417_v27, %v5227_v18  ;;  %v4407_v36 = vadd.f32 %v4406_v38, %v4038_v28  ;;  %v4041_v41 = vadd.f32 %v4040_v30, %v4039_v29 }
 0x233   : > { %v3890_v42 = vpack.c.bf16 %v1886_v33, %v1886_v33  ;;  %v1887_v43 = vmax.f32 %v1879_v35, 0.0  ;;  %v5231_v44 = vpop.f32.mrb[12].mxu0  ;;  %v4408_v45 = vadd.f32 %v4407_v36, %v4312_v16  ;;  %v4413_v46 = vadd.f32 %v4412_v26, %v4041_v41 }
 0x234   : > { %v1849_v47 = vpop.f32.mrb[13].mxu0 }
 0x235   : > { %v1919_v48 = vshrl.u32 %v3890_v42, 16  ;;  %v1922_v50 = vshll.u32 %v3890_v42, 16  ;;  %v1894_v51 = vpack.c.bf16 %v1887_v43, %v1886_v33  ;;  %v3891_v52 = vpack.c.bf16 %v1887_v43, %v1887_v43  ;;  %v5233_v53 = vpop.f32.mrb[14].mxu0  ;;  %v4042_v54 = vpop.f32.mrb[40].mxu1 }
 0x236   : > { %v1880_v55 = vadd.f32 %v4408_v45, %v5227_v18  ;;  %v4414_v56 = vadd.f32 %v4413_v46, %v4313_v21  ;;  %v1852_v39 = vpop.f32.mrb[15].mxu0  ;;  %v4043_v57 = vpop.f32.mrb[41].mxu1 }
 0x237   : > { %v1921_v58 = vrot.slane %v1919_v48, 7  ;;  %v1990_v38 = vrot.slane %v1922_v50, 1  ;;  %v1926_v59 = vshrl.u32 %v3891_v52, 16  ;;  %v1929_v34 = vshll.u32 %v3891_v52, 16  ;;  %v4045_v49 = vpop.f32.mrb[42].mxu1 }
 0x238   : > { %v1888_v60 = vmax.f32 %v1880_v55, 0.0  ;;  %v1881_v26 = vadd.f32 %v4414_v56, %v5227_v18  ;;  %v4044_v61 = vadd.f32 %v4043_v57, %v4042_v54  ;;  %v4046_v62 = vpop.f32.mrb[43].mxu1 }
 0x239   : > { %v1924_v0 = vor.u32 %v1922_v50, %v1921_v58  ;;  %v1991_v22 = vor.u32 %v1990_v38, %v1919_v48  ;;  %v1928_v40 = vrot.slane %v1926_v59, 7  ;;  %v1992_v32 = vrot.slane %v1929_v34, 1 }
 0x23a   : > { %v3892_v3 = vpack.c.bf16 %v1888_v60, %v1888_v60  ;;  %v1889_v4 = vmax.f32 %v1881_v26, 0.0  ;;  %v4422_v6 = vadd.f32 %v5216_v63, %v4044_v61  ;;  %v4047_v9 = vadd.f32 %v4046_v62, %v4045_v49 }
 0x23b   : > { %v2014_v10 = vsel %vm4877_vm4, %v1991_v22, 0  ;;  %v1931_v11 = vor.u32 %v1929_v34, %v1928_v40  ;;  %v5242_v12 = vsel %vm4883_vm5, 0, %v1924_v0  ;;  %v1993_v13 = vor.u32 %v1992_v32, %v1926_v59  ;;  %v4618_v22 = vld [vmem:[%s5504_s3 + $0x48] sm:$0xff]  }
 0x23c   : > { %v3655_v15 = vcombine.low %v2014_v10, %v2014_v10  ;;  %v5245_v37 = vcombine.low %v5242_v12, %v1894_v51  ;;  %v1933_v16 = vshrl.u32 %v3892_v3, 16  ;;  %v1936_v17 = vshll.u32 %v3892_v3, 16 }
 0x23d   : > { %v1983_v19 = vsel %vm4883_vm5, 0, %v1931_v11  ;;  %v2015_v63 = vsel %vm4877_vm4, %v1993_v13, 0  ;;  %v1895_v20 = vpack.c.bf16 %v1889_v4, %v1888_v60  ;;  %v3893_v21 = vpack.c.bf16 %v1889_v4, %v1889_v4  ;;  %v4048_v31 = vpop.f32.mrb[44].mxu1  ;;  %v4616_v60 = vld [vmem:[%s5504_s3] sm:$0xff]  }
 0x23e   : > { %2088 = vst [vmem:[#allocation3 + $0x14] sm:$0xf] %v3655_v15  ;;  %v5252_v23 = vsel %vm563_vm0, %v1983_v19, %v1894_v51  ;;  %v3658_v24 = vcombine.low %v2015_v63, %v2015_v63  ;;  %v1935_v25 = vrot.slane %v1933_v16, 7  ;;  %v1994_v27 = vrot.slane %v1936_v17, 1  ;;  %v4049_v28 = vpop.f32.mrb[45].mxu1 }
 0x23f   : > { %v1940_v29 = vshrl.u32 %v3893_v21, 16  ;;  %v1943_v30 = vshll.u32 %v3893_v21, 16  ;;  %v4423_v33 = vadd.f32 %v4422_v6, %v1849_v47  ;;  %v4428_v35 = vadd.f32 %v5218_v2, %v4047_v9  ;;  %v4051_v36 = vpop.f32.mrb[46].mxu1 }
 0x240   : > { %2090 = vst [vmem:[#allocation3 + $0x20] sm:$0xf] %v3658_v24  ;;  %v1938_v41 = vor.u32 %v1936_v17, %v1935_v25  ;;  %v1995_v42 = vor.u32 %v1994_v27, %v1933_v16  ;;  %v4050_v43 = vadd.f32 %v4049_v28, %v4048_v31  ;;  %v4052_v45 = vpop.f32.mrb[47].mxu1  ;;  %v4684_v46 = vcombine.low %v5242_v12, %v5252_v23  ;;  %v4620_v31 = vld [vmem:[%s5504_s3 + $0x50] sm:$0xff]  }
 0x241   : > { %v1942_v48 = vrot.slane %v1940_v29, 7  ;;  %v1996_v50 = vrot.slane %v1943_v30, 1  ;;  %v1882_v51 = vadd.f32 %v4423_v33, %v5227_v18  ;;  %v4429_v52 = vadd.f32 %v4428_v35, %v1852_v39 }
 0x242   : > { %v2016_v54 = vsel %vm4877_vm4, %v1995_v42, 0  ;;  %v5262_v2 = vsel %vm4883_vm5, 0, %v1938_v41  ;;  %v4419_v47 = vadd.f32 %v5220_v5, %v4050_v43  ;;  %v4053_v55 = vadd.f32 %v4052_v45, %v4051_v36 }
 0x243   : > { %v3660_v56 = vcombine.low %v2016_v54, %v2016_v54  ;;  %v1945_v57 = vor.u32 %v1943_v30, %v1942_v48  ;;  %v1997_v58 = vor.u32 %v1996_v50, %v1940_v29  ;;  %v3659_v38 = vcombine.low %v5262_v2, %v1895_v20  ;;  %v4624_v48 = vld [vmem:[%s5504_s3 + $0x58] sm:$0xff]   ;;  %v4625_v50 = vld [vmem:[%s5504_s3 + $0x88] sm:$0xff]  }
 0x244   : > { %v1890_v59 = vmax.f32 %v1882_v51, 0.0  ;;  %v1883_v34 = vadd.f32 %v4429_v52, %v5227_v18  ;;  %v4420_v39 = vadd.f32 %v4419_v47, %v5231_v44  ;;  %v4425_v49 = vadd.f32 %v5222_v8, %v4053_v55 }
 0x245   : > { %2092 = vst [vmem:[#allocation3 + $0x2c] sm:$0xf] %v3660_v56  ;;  %v1985_v5 = vsel %vm4883_vm5, 0, %v1945_v57  ;;  %v2017_v26 = vsel %vm4877_vm4, %v1997_v58, 0  ;;  %v3723_v61 = vcombine.high %v5245_v37, %v5252_v23  ;;  %v5294_v17 = vcombine.high %v5252_v23, %v3659_v38 }
 0x246   : > { %v5279_v62 = vsel %vm563_vm0, %v1985_v5, %v1895_v20  ;;  %v3663_v44 = vcombine.low %v2017_v26, %v2017_v26  ;;  %v3894_v0 = vpack.c.bf16 %v1890_v59, %v1890_v59  ;;  %v1891_v8 = vmax.f32 %v1883_v34, 0.0  ;;  %v4626_v5 = vld [vmem:[%s5504_s3 + $0x18] sm:$0xff]  }
 0x247   : > { %v1884_v40 = vadd.f32 %v4420_v39, %v5227_v18  ;;  %v4426_v32 = vadd.f32 %v4425_v49, %v5233_v53  ;;  %2472 = vmatprep.mubr.bf16.mxu1 %v3723_v61  ;;  %v4615_v3 = vld [vmem:[#allocation3 + $0x14] ss:$12 sps:$4 sm:$0xff]   ;;  %v3726_v4 = vcombine.high %v3659_v38, %v5279_v62  ;;  %v4685_v6 = vcombine.low %v5262_v2, %v5279_v62 }
 0x248   : > { %2094 = vst [vmem:[#allocation3 + $0x38] sm:$0xf] %v3663_v44  ;;  %v1947_v9 = vshrl.u32 %v3894_v0, 16  ;;  %v1950_v10 = vshll.u32 %v3894_v0, 16  ;;  %v1896_v11 = vpack.c.bf16 %v1891_v8, %v1890_v59  ;;  %v3895_v13 = vpack.c.bf16 %v1891_v8, %v1891_v8  ;;  %2473 = vmatmul.mubr.bf16.vlgmr.msra.gmra.mrb[48].mxu1 %v4684_v46  ;;  %4334 = vmatprep.mubr.bf16.mxu0 %v4615_v3  ;;  %v4619_v53 = vld [vmem:[%s5504_s3 + $0x8] sm:$0xff]   ;;  %v4627_v8 = vld [vmem:[%s5504_s3 + $0x60] sm:$0xff]  }
 0x249   : > { %v1892_v15 = vmax.f32 %v1884_v40, 0.0  ;;  %v1885_v16 = vadd.f32 %v4426_v32, %v5227_v18  ;;  %4119 = vmatpush3.bf16.msra.mxu1 %v4616_v60  ;;  %2480 = vmatprep.mubr.bf16.mxu1 %v3726_v4  ;;  %v5301_v25 = vcombine.low %v5252_v23, %v5262_v2  ;;  %v4623_v23 = vld [vmem:[%s5504_s3 + $0x10] sm:$0xff]  }
 0x24a   : > { %v1949_v19 = vrot.slane %v1947_v9, 7  ;;  %v1998_v63 = vrot.slane %v1950_v10, 1  ;;  %v1954_v20 = vshrl.u32 %v3895_v13, 16  ;;  %v1957_v21 = vshll.u32 %v3895_v13, 16  ;;  %4120 = vmatprep.subr.bf16.mxu1 %v4618_v22 }
 0x24b   : > { %v3896_v18 = vpack.c.bf16 %v1892_v15, %v1892_v15  ;;  %v1893_v24 = vmax.f32 %v1885_v16, 0.0 }
 0x24c   : > { %v1952_v27 = vor.u32 %v1950_v10, %v1949_v19  ;;  %v1999_v28 = vor.u32 %v1998_v63, %v1947_v9  ;;  %v1956_v29 = vrot.slane %v1954_v20, 7  ;;  %v2000_v30 = vrot.slane %v1957_v21, 1  ;;  %v4633_v63 = vld [vmem:[%s5504_s3 + $0x28] sm:$0xff]  }
 0x24d   : > { %v1961_v33 = vshrl.u32 %v3896_v18, 16  ;;  %v1964_v35 = vshll.u32 %v3896_v18, 16  ;;  %v1897_v36 = vpack.c.bf16 %v1893_v24, %v1892_v15  ;;  %v3897_v41 = vpack.c.bf16 %v1893_v24, %v1893_v24  ;;  %4121 = vmatpush3.bf16.msra.mxu1 %v4619_v53  ;;  %v4637_v18 = vld [vmem:[%s5504_s3 + $0x30] sm:$0xff]   ;;  %v5375_v24 = vld [vmem:[#allocation2] sm:$0xff] }
 0x24e   : > { %v2018_v42 = vsel %vm4877_vm4, %v1999_v28, 0  ;;  %v1959_v43 = vor.u32 %v1957_v21, %v1956_v29  ;;  %v1986_v45 = vsel %vm4883_vm5, 0, %v1952_v27  ;;  %v2001_v46 = vor.u32 %v2000_v30, %v1954_v20  ;;  %4122 = vmatprep.subr.bf16.mxu1 %v4620_v31  ;;  %v4634_v21 = vld [vmem:[%s5504_s3 + $0x70] sm:$0xff]   ;;  %v4635_v31 = vld [vmem:[%s5504_s3 + $0xa0] sm:$0xff]   ;;  %v4639_v28 = vld [vmem:[%s5504_s3 + $0x78] sm:$0xff]  }
 0x24f   : > { %v3665_v51 = vcombine.low %v2018_v42, %v2018_v42  ;;  %v3664_v52 = vcombine.low %v1986_v45, %v1896_v11  ;;  %v1963_v54 = vrot.slane %v1961_v33, 7  ;;  %v2002_v2 = vrot.slane %v1964_v35, 1  ;;  %v4622_v47 = vld [vmem:[#allocation3 + $0x2c] ss:$12 sps:$4 sm:$0xff]   ;;  %v4640_v29 = vld [vmem:[%s5504_s3 + $0xa8] sm:$0xff]  }
 0x250   : > { %v1987_v55 = vsel %vm4883_vm5, 0, %v1959_v43  ;;  %v2019_v56 = vsel %vm4877_vm4, %v2001_v46, 0  ;;  %v1968_v57 = vshrl.u32 %v3897_v41, 16  ;;  %v1971_v58 = vshll.u32 %v3897_v41, 16  ;;  %2481 = vmatmul.mubr.bf16.gmra.mrb[52].mxu1 %v4685_v6  ;;  %4335 = vmatmul.mubr.bf16.vlgmr.msra.gmra.mrb[16].mxu0 %v4622_v47  ;;  %v4644_v41 = vld [vmem:[%s5504_s3 + $0x180] sm:$0xff]   ;;  %v4646_v43 = vld [vmem:[%s5504_s3 + $0x1c8] sm:$0xff]  }
 0x251   : > { %2096 = vst [vmem:[#allocation3 + $0x44] sm:$0xf] %v3665_v51  ;;  %v3667_v38 = vsel %vm563_vm0, %v1987_v55, %v1896_v11  ;;  %v3668_v59 = vcombine.low %v2019_v56, %v2019_v56  ;;  %v1966_v34 = vor.u32 %v1964_v35, %v1963_v54  ;;  %v2003_v39 = vor.u32 %v2002_v2, %v1961_v33  ;;  %v4630_v11 = vld [vmem:[%s5504_s3 + $0x20] sm:$0xff]   ;;  %v4641_v35 = vld [vmem:[%s5504_s3 + $0x38] sm:$0xff]   ;;  %v4647_v46 = vld [vmem:[%s5504_s3 + $0x188] sm:$0xff]  }
 0x252   : > { %v1970_v49 = vrot.slane %v1968_v57, 7  ;;  %v2004_v60 = vrot.slane %v1971_v58, 1  ;;  %4123 = vmatpush3.bf16.msra.mxu1 %v4623_v23  ;;  %4343 = vmatpush3.bf16.msra.mxu0 %v5213_v14  ;;  %v3729_v26 = vcombine.high %v3664_v52, %v3667_v38  ;;  %v4687_v61 = vcombine.low %v1986_v45, %v3667_v38  ;;  %v4628_v14 = vld [vmem:[%s5504_s3 + $0x90] sm:$0xff]   ;;  %v4638_v33 = vld [vmem:[#allocation3 + $0x8] ss:$12 sps:$4 sm:$0xff]   ;;  %v4653_v51 = vld [vmem:[%s5504_s3 + $0x1d8] sm:$0xff]  }
 0x253   : > { %2098 = vst [vmem:[#allocation3 + $0x50] sm:$0xf] %v3668_v59  ;;  %v2020_v44 = vsel %vm4877_vm4, %v2003_v39, 0  ;;  %v1988_v0 = vsel %vm4883_vm5, 0, %v1966_v34  ;;  %4124 = vmatprep.subr.bf16.mxu1 %v4624_v48  ;;  %4344 = vmatprep.subr.bf16.mxu0 %v4625_v50  ;;  %v5336_v22 = vcombine.high %v5279_v62, %v3664_v52  ;;  %v5339_v40 = vcombine.low %v5279_v62, %v1986_v45  ;;  %v4645_v45 = vld [vmem:[%s5504_s3 + $0xb8] sm:$0xff]   ;;  %v4650_v23 = vld [vmem:[%s5504_s3 + $0x200] sm:$0xff]  }
 0x254   : > { %v3670_v32 = vcombine.low %v2020_v44, %v2020_v44  ;;  %v1973_v3 = vor.u32 %v1971_v58, %v1970_v49  ;;  %v2005_v4 = vor.u32 %v2004_v60, %v1968_v57  ;;  %v3669_v6 = vcombine.low %v1988_v0, %v1897_v36  ;;  %2488 = vmatprep.mubr.bf16.mxu1 %v3729_v26  ;;  %v4652_v48 = vld [vmem:[%s5504_s3 + $0x190] sm:$0xff]   ;;  %v4654_v54 = vld [vmem:[%s5504_s3 + $0x208] sm:$0xff]   ;;  %v4655_v2 = vld [vmem:[%s5504_s3 + $0x198] sm:$0xff]  }
 0x255   : > { %v5350_v13 = vcombine.low %v3667_v38, %v1988_v0  ;;  %v3759_v27 = vcombine.high %v5375_v24, %v5245_v37  ;;  %v4643_v37 = vld [vmem:[%s5504_s3 + $0x1c0] sm:$0xff]   ;;  %v4691_v42 = vcombine.low %v5375_v24, %v5242_v12  ;;  %v4649_v12 = vld [vmem:[%s5504_s3 + $0x1d0] sm:$0xff]   ;;  %v4661_v58 = vld [vmem:[%s5504_s3 + $0x1e8] sm:$0xff]  }
 0x256   : > { %2100 = vst [vmem:[#allocation3 + $0x5c] sm:$0xf] %v3670_v32  ;;  %v1989_v9 = vsel %vm4883_vm5, 0, %v1973_v3  ;;  %v2021_v10 = vsel %vm4877_vm4, %v2005_v4, 0  ;;  %4125 = vmatpush3.bf16.msra.mxu1 %v4626_v5  ;;  %4345 = vmatpush3.bf16.msra.mxu0 %v4625_v50  ;;  %v5348_v62 = vcombine.high %v3667_v38, %v3669_v6  ;;  %v4648_v50 = vld [vmem:[#allocation3 + $0x20] ss:$12 sps:$4 sm:$0xff]  }
 0x257   : > { %v5353_v15 = vsel %vm563_vm0, %v1989_v9, %v1897_v36  ;;  %v3673_v16 = vcombine.low %v2021_v10, %v2021_v10  ;;  %4126 = vmatprep.subr.bf16.mxu1 %v4627_v8  ;;  %4346 = vmatprep.subr.bf16.mxu0 %v4628_v14  ;;  %v4642_v36 = vld [vmem:[%s5504_s3 + $0xb0] sm:$0xff]   ;;  %v4657_v47 = vld [vmem:[%s5504_s3 + $0x1e0] sm:$0xff]   ;;  %v4662_v59 = vld [vmem:[%s5504_s3 + $0x218] sm:$0xff]  }
 0x258   : > { %2489 = vmatmul.mubr.bf16.gmra.mrb[56].mxu1 %v4687_v61  ;;  %v3732_v53 = vcombine.high %v3669_v6, %v5353_v15  ;;  %v4690_v19 = vcombine.low %v1988_v0, %v5353_v15  ;;  %v4651_v52 = vld [vmem:[#allocation3 + $0x38] ss:$12 sps:$4 sm:$0xff]   ;;  %v4659_v56 = vld [vmem:[%s5504_s3 + $0x1a0] sm:$0xff]   ;;  %v4663_v34 = vld [vmem:[%s5504_s3 + $0x1a8] sm:$0xff]   ;;  %v3851_v8 = vcombine.low %v5353_v15, %v5375_v24 }
 0x259   : > { %2102 = vst [vmem:[#allocation3 + $0x68] sm:$0xf] %v3673_v16  ;;  %v4658_v55 = vld [vmem:[%s5504_s3 + $0x210] sm:$0xff]   ;;  %v4660_v38 = vld [vmem:[#allocation3 + $0x20] ss:$12 sps:$4 sm:$0xff]   ;;  %v4668_v26 = vld [vmem:[%s5504_s3 + $0x228] sm:$0xff]  }
 0x25a   : > { %v4629_v20 = vld [vmem:[#allocation3 + $0x44] ss:$12 sps:$4 sm:$0xff]   ;;  %4127 = vmatpush3.bf16.msra.mxu1 %v4630_v11  ;;  %4347 = vmatpush3.bf16.msra.mxu0 %v4628_v14  ;;  %v4664_v39 = vld [vmem:[%s5504_s3 + $0x1f0] sm:$0xff]   ;;  %v4665_v49 = vld [vmem:[%s5504_s3 + $0x220] sm:$0xff]  }
 0x25b   : > { %4128 = vmatprep.subr.bf16.mxu1 %v4631_v1  ;;  %4348 = vmatprep.subr.bf16.mxu0 %v4632_v7  ;;  %v4666_v60 = vld [vmem:[%s5504_s3 + $0x1b0] sm:$0xff]   ;;  %v4667_v5 = vld [vmem:[%s5504_s3 + $0x1f8] sm:$0xff]  }
 0x25c   : > { %4338 = vmatprep.mubr.bf16.mxu0 %v4629_v20  ;;  %2496 = vmatprep.mubr.bf16.mxu1 %v3732_v53  ;;  %v4669_v61 = vld [vmem:[%s5504_s3 + $0x1b8] sm:$0xff]   ;;  %v4670_v44 = vld [vmem:[%s5504_s3 + $0x230] sm:$0xff]  }
 0x25d   : > { %v4656_v57 = vld [vmem:[#allocation3 + $0x50] ss:$12 sps:$4 sm:$0xff]   ;;  %v4671_v0 = vld [vmem:[%s5504_s3 + $0x238] sm:$0xff]  }
 0x25e   : > { %4129 = vmatpush3.bf16.msra.mxu1 %v4633_v63  ;;  %4349 = vmatpush3.bf16.msra.mxu0 %v4632_v7  ;;  %v4673_v14 = vld [vmem:[#allocation3 + $0x50] ss:$12 sps:$4 sm:$0xff]  }
 0x25f   : > { %4130 = vmatprep.subr.bf16.mxu1 %v4634_v21  ;;  %4350 = vmatprep.subr.bf16.mxu0 %v4635_v31 }
 0x260   : > { %2497 = vmatmul.mubr.bf16.gmra.mrb[60].mxu1 %v4690_v19  ;;  %v4636_v30 = vld [vmem:[#allocation3 + $0x5c] ss:$12 sps:$4 sm:$0xff]  }
 0x261   : > { %2810 = vmatprep.mubr.bf16.mxu1 %v3759_v27  ;;  %4339 = vmatmul.mubr.bf16.gmra.mrb[20].mxu0 %v4636_v30 }
 0x262   : > { %4131 = vmatpush3.bf16.msra.mxu1 %v4637_v18  ;;  %4351 = vmatpush3.bf16.msra.mxu0 %v4635_v31 }
 0x263   : > { %4358 = vmatprep.mubr.bf16.mxu0 %v4638_v33  ;;  %4132 = vmatprep.subr.bf16.mxu1 %v4639_v28 }
 0x264   : > { %4352 = vmatprep.subr.bf16.mxu0 %v4640_v29 }
 0x266   : > { %4133 = vmatpush3.bf16.msra.mxu1 %v4641_v35  ;;  %4353 = vmatpush3.bf16.msra.mxu0 %v4640_v29 }
 0x267   : > { %4170 = vmatprep.subr.bf16.mxu1 %v4643_v37  ;;  %4354 = vmatprep.subr.bf16.mxu0 %v4642_v36 }
 0x269   : > { %2811 = vmatmul.mubr.bf16.vlgmr.msra.gmra.mrb[64].mxu1 %v4691_v42 }
 0x26a   : > { %4171 = vmatpush3.bf16.msra.mxu1 %v4644_v41  ;;  %2818 = vmatprep.mubr.bf16.mxu1 %v5294_v17 }
 0x26b   : > { %4355 = vmatpush3.bf16.msra.mxu0 %v4642_v36  ;;  %4172 = vmatprep.subr.bf16.mxu1 %v4646_v43 }
 0x26c   : > { %4356 = vmatprep.subr.bf16.mxu0 %v4645_v45 }
 0x26e   : > { %4173 = vmatpush3.bf16.msra.mxu1 %v4647_v46 }
 0x26f   : > { %4357 = vmatpush3.bf16.msra.mxu0 %v4645_v45  ;;  %4174 = vmatprep.subr.bf16.mxu1 %v4649_v12 }
 0x270   : > { %4366 = vmatprep.subr.bf16.mxu0 %v4650_v23 }
 0x271   : > { %2819 = vmatmul.mubr.bf16.gmra.mrb[68].mxu1 %v5301_v25 }
 0x272   : > { %4359 = vmatmul.mubr.bf16.vlgmr.msra.gmra.mrb[16].mxu0 %v4648_v50  ;;  %4175 = vmatpush3.bf16.msra.mxu1 %v4652_v48 }
 0x273   : > { %4362 = vmatprep.mubr.bf16.mxu0 %v4651_v52  ;;  %4367 = vmatpush3.bf16.msra.mxu0 %v4650_v23 }
 0x274   : > { %2826 = vmatprep.mubr.bf16.mxu1 %v5336_v22  ;;  %4176 = vmatprep.subr.bf16.mxu1 %v4653_v51 }
 0x275   : > { %4368 = vmatprep.subr.bf16.mxu0 %v4654_v54 }
 0x276   : > { %4177 = vmatpush3.bf16.msra.mxu1 %v4655_v2 }
 0x277   : > { %4369 = vmatpush3.bf16.msra.mxu0 %v4654_v54  ;;  %4178 = vmatprep.subr.bf16.mxu1 %v4657_v47 }
 0x278   : > { %4370 = vmatprep.subr.bf16.mxu0 %v4658_v55 }
 0x279   : > { %2827 = vmatmul.mubr.bf16.gmra.mrb[72].mxu1 %v5339_v40 }
 0x27a   : > { %4363 = vmatmul.mubr.bf16.gmra.mrb[20].mxu0 %v4656_v57  ;;  %4179 = vmatpush3.bf16.msra.mxu1 %v4659_v56 }
 0x27b   : > { %4371 = vmatpush3.bf16.msra.mxu0 %v4658_v55  ;;  %4382 = vmatprep.mubr.bf16.mxu0 %v4660_v38 }
 0x27c   : > { %2834 = vmatprep.mubr.bf16.mxu1 %v5348_v62  ;;  %4180 = vmatprep.subr.bf16.mxu1 %v4661_v58 }
 0x27d   : > { %4372 = vmatprep.subr.bf16.mxu0 %v4662_v59 }
 0x27e   : > { %4181 = vmatpush3.bf16.msra.mxu1 %v4663_v34 }
 0x27f   : > { %4373 = vmatpush3.bf16.msra.mxu0 %v4662_v59  ;;  %4182 = vmatprep.subr.bf16.mxu1 %v4664_v39 }
 0x280   : > { %4374 = vmatprep.subr.bf16.mxu0 %v4665_v49 }
 0x281   : > { %2835 = vmatmul.mubr.bf16.gmra.mrb[76].mxu1 %v5350_v13 }
 0x282   : > { %4183 = vmatpush3.bf16.msra.mxu1 %v4666_v60  ;;  %3214 = vmatprep.mubr.bf16.mxu1 %v5294_v17  ;;  %v4672_v17 = vld [vmem:[#allocation3 + $0x38] ss:$12 sps:$4 sm:$0xff]  }
 0x283   : > { %4375 = vmatpush3.bf16.msra.mxu0 %v4665_v49  ;;  %4184 = vmatprep.subr.bf16.mxu1 %v4667_v5 }
 0x284   : > { %4376 = vmatprep.subr.bf16.mxu0 %v4668_v26 }
 0x286   : > { %4185 = vmatpush3.bf16.msra.mxu1 %v4669_v61 }
 0x287   : > { %4377 = vmatpush3.bf16.msra.mxu0 %v4668_v26  ;;  %4390 = vmatprep.subr.bf16.mxu1 %v4650_v23 }
 0x288   : > { %4378 = vmatprep.subr.bf16.mxu0 %v4670_v44 }
 0x289   : > { %3215 = vmatmul.mubr.bf16.vlgmr.msra.gmra.mrb[80].mxu1 %v5301_v25  ;;  %v3852_v25 = vcombine.high %v5353_v15, %v5375_v24 }
 0x28a   : > { %4398 = vmatpush3.bf16.msra.mxu1 %v4650_v23  ;;  %3222 = vmatprep.mubr.bf16.mxu1 %v5336_v22  ;;  %v4674_v22 = vld [vmem:[#allocation3 + $0x68] ss:$12 sps:$4 sm:$0xff]  }
 0x28b   : > { %4379 = vmatpush3.bf16.msra.mxu0 %v4670_v44  ;;  %4391 = vmatprep.subr.bf16.mxu1 %v4654_v54 }
 0x28c   : > { %4380 = vmatprep.subr.bf16.mxu0 %v4671_v0 }
 0x28e   : > { %4399 = vmatpush3.bf16.msra.mxu1 %v4654_v54 }
 0x28f   : > { %4381 = vmatpush3.bf16.msra.mxu0 %v4671_v0  ;;  %4392 = vmatprep.subr.bf16.mxu1 %v4658_v55 }
 0x291   : > { %3223 = vmatmul.mubr.bf16.gmra.mrb[84].mxu1 %v5339_v40 }
 0x292   : > { %4383 = vmatmul.mubr.bf16.vlgmr.msra.gmra.mrb[16].mxu0 %v4672_v17  ;;  %4400 = vmatpush3.bf16.msra.mxu1 %v4658_v55 }
 0x293   : > { %3230 = vmatprep.mubr.bf16.mxu1 %v5348_v62  ;;  %4393 = vmatprep.subr.bf16.mxu1 %v4662_v59 }
 0x296   : > { %4401 = vmatpush3.bf16.msra.mxu1 %v4662_v59 }
 0x297   : > { %4394 = vmatprep.subr.bf16.mxu1 %v4665_v49 }
 0x299   : > { %3231 = vmatmul.mubr.bf16.gmra.mrb[88].mxu1 %v5350_v13 }
 0x29a   : > { %4402 = vmatpush3.bf16.msra.mxu1 %v4665_v49  ;;  %3238 = vmatprep.mubr.bf16.mxu1 %v3852_v25 }
 0x29b   : > { %4395 = vmatprep.subr.bf16.mxu1 %v4668_v26 }
 0x29e   : > { %4403 = vmatpush3.bf16.msra.mxu1 %v4668_v26 }
 0x29f   : > { %4396 = vmatprep.subr.bf16.mxu1 %v4670_v44 }
 0x2a1   : > { %3239 = vmatmul.mubr.bf16.gmra.mrb[92].mxu1 %v3851_v8 }
 0x2a2   : > { %4404 = vmatpush3.bf16.msra.mxu1 %v4670_v44  ;;  %4386 = vmatprep.mubr.bf16.mxu1 %v4673_v14 }
 0x2a3   : > { %4397 = vmatprep.subr.bf16.mxu1 %v4671_v0 }
 0x2a6   : > { %4405 = vmatpush3.bf16.msra.mxu1 %v4671_v0 }
 0x2a9   : > { %4387 = vmatmul.mubr.bf16.vlgmr.msra.gmra.mrb[96].mxu1 %v4674_v22 }
 0x31b   : > { %v4082_v40 = vpop.f32.mrb[48].mxu1 }
 0x31c   : > { %v4083_v32 = vpop.f32.mrb[49].mxu1 }
 0x31d   : > { %v4084_v3 = vadd.f32 %v4083_v32, %v4082_v40  ;;  %v4085_v4 = vpop.f32.mrb[50].mxu1 }
 0x31e   : > { %v4086_v6 = vpop.f32.mrb[51].mxu1 }
 0x31f   : > { %v4087_v9 = vadd.f32 %v4086_v6, %v4085_v4 }
 0x323   : > { %v4088_v10 = vpop.f32.mrb[52].mxu1 }
 0x324   : > { %v4089_v11 = vpop.f32.mrb[53].mxu1 }
 0x325   : > { %v4090_v62 = vadd.f32 %v4089_v11, %v4088_v10  ;;  %v4091_v13 = vpop.f32.mrb[54].mxu1 }
 0x326   : > { %v4092_v16 = vpop.f32.mrb[55].mxu1 }
 0x327   : > { %v4093_v15 = vadd.f32 %v4092_v16, %v4091_v13 }
 0x32b   : > { %v4094_v1 = vpop.f32.mrb[56].mxu1 }
 0x32c   : > { %v4095_v7 = vpop.f32.mrb[57].mxu1 }
 0x32d   : > { %v4096_v53 = vadd.f32 %v4095_v7, %v4094_v1  ;;  %v4097_v19 = vpop.f32.mrb[58].mxu1 }
 0x32e   : > { %v4098_v63 = vpop.f32.mrb[59].mxu1 }
 0x32f   : > { %v4099_v20 = vadd.f32 %v4098_v63, %v4097_v19 }
 0x333   : > { %v4100_v21 = vpop.f32.mrb[60].mxu1 }
 0x334   : > { %v4101_v31 = vpop.f32.mrb[61].mxu1 }
 0x335   : > { %v4102_v18 = vadd.f32 %v4101_v31, %v4100_v21  ;;  %v4103_v24 = vpop.f32.mrb[62].mxu1 }
 0x336   : > { %v4104_v27 = vpop.f32.mrb[63].mxu1 }
 0x337   : > { %v4105_v28 = vadd.f32 %v4104_v27, %v4103_v24 }
 0x33c   : > { %v4134_v29 = vpop.f32.mrb[64].mxu1 }
 0x33d   : > { %v4135_v30 = vpop.f32.mrb[65].mxu1 }
 0x33e   : > { %v4136_v33 = vadd.f32 %v4135_v30, %v4134_v29  ;;  %v4137_v35 = vpop.f32.mrb[66].mxu1 }
 0x33f   : > { %v4138_v37 = vpop.f32.mrb[67].mxu1 }
 0x340   : > { %v4433_v36 = vadd.f32 %v4136_v33, %v4084_v3  ;;  %v4139_v41 = vadd.f32 %v4138_v37, %v4137_v35 }
 0x342   : > { %v4439_v42 = vadd.f32 %v4139_v41, %v4087_v9 }
 0x344   : > { %v4140_v43 = vpop.f32.mrb[68].mxu1 }
 0x345   : > { %v4141_v45 = vpop.f32.mrb[69].mxu1 }
 0x346   : > { %v4142_v46 = vadd.f32 %v4141_v45, %v4140_v43  ;;  %v4143_v12 = vpop.f32.mrb[70].mxu1 }
 0x347   : > { %v4144_v23 = vpop.f32.mrb[71].mxu1 }
 0x348   : > { %v4430_v48 = vadd.f32 %v4142_v46, %v4090_v62  ;;  %v4145_v50 = vadd.f32 %v4144_v23, %v4143_v12 }
 0x34a   : > { %v4436_v51 = vadd.f32 %v4145_v50, %v4093_v15 }
 0x34c   : > { %v4146_v52 = vpop.f32.mrb[72].mxu1 }
 0x34d   : > { %v4364_v54 = vpop.f32.mrb[20].mxu0  ;;  %v4147_v2 = vpop.f32.mrb[73].mxu1 }
 0x34e   : > { %v2893_v47 = vpop.f32.mrb[21].mxu0  ;;  %v4148_v55 = vadd.f32 %v4147_v2, %v4146_v52  ;;  %v4149_v56 = vpop.f32.mrb[74].mxu1 }
 0x34f   : > { %v4365_v57 = vpop.f32.mrb[22].mxu0  ;;  %v4150_v58 = vpop.f32.mrb[75].mxu1 }
 0x350   : > { %v4446_v38 = vadd.f32 %v4148_v55, %v4096_v53  ;;  %v2896_v59 = vpop.f32.mrb[23].mxu0  ;;  %v4151_v34 = vadd.f32 %v4150_v58, %v4149_v56 }
 0x352   : > { %v4454_v39 = vadd.f32 %v4151_v34, %v4099_v20  ;;  %v4447_v49 = vadd.f32 %v4446_v38, %v2893_v47 }
 0x354   : > { %v4152_v60 = vpop.f32.mrb[76].mxu1  ;;  %v4455_v5 = vadd.f32 %v4454_v39, %v2896_v59 }
 0x355   : > { %v4153_v26 = vpop.f32.mrb[77].mxu1 }
 0x356   : > { %v4154_v61 = vadd.f32 %v4153_v26, %v4152_v60  ;;  %v4155_v44 = vpop.f32.mrb[78].mxu1 }
 0x357   : > { %v4156_v0 = vpop.f32.mrb[79].mxu1 }
 0x358   : > { %v4442_v17 = vadd.f32 %v4154_v61, %v4102_v18  ;;  %v4157_v25 = vadd.f32 %v4156_v0, %v4155_v44 }
 0x35a   : > { %v4450_v8 = vadd.f32 %v4157_v25, %v4105_v28  ;;  %v4443_v14 = vadd.f32 %v4442_v17, %v4364_v54 }
 0x35c   : > { %v4186_v22 = vpop.f32.mrb[80].mxu1  ;;  %v4451_v40 = vadd.f32 %v4450_v8, %v4365_v57 }
 0x35d   : > { %v4187_v32 = vpop.f32.mrb[81].mxu1 }
 0x35e   : > { %v4188_v3 = vadd.f32 %v4187_v32, %v4186_v22  ;;  %v4189_v4 = vpop.f32.mrb[82].mxu1 }
 0x35f   : > { %v4190_v6 = vpop.f32.mrb[83].mxu1 }
 0x360   : > { %v4191_v9 = vadd.f32 %v4190_v6, %v4189_v4  ;;  %v4434_v10 = vadd.f32 %v4433_v36, %v4188_v3 }
 0x362   : > { %v4440_v11 = vadd.f32 %v4439_v42, %v4191_v9 }
 0x364   : > { %v4192_v62 = vpop.f32.mrb[84].mxu1 }
 0x365   : > { %v4384_v13 = vpop.f32.mrb[16].mxu0  ;;  %v4193_v16 = vpop.f32.mrb[85].mxu1 }
 0x366   : > { %v3281_v15 = vpop.f32.mrb[17].mxu0  ;;  %v4194_v1 = vadd.f32 %v4193_v16, %v4192_v62  ;;  %v4195_v7 = vpop.f32.mrb[86].mxu1 }
 0x367   : > { %v4435_v53 = vadd.f32 %v4434_v10, %v3281_v15  ;;  %v4385_v19 = vpop.f32.mrb[18].mxu0  ;;  %v4196_v63 = vpop.f32.mrb[87].mxu1 }
 0x368   : > { %v4431_v20 = vadd.f32 %v4430_v48, %v4194_v1  ;;  %v3284_v21 = vpop.f32.mrb[19].mxu0  ;;  %v4197_v31 = vadd.f32 %v4196_v63, %v4195_v7 }
 0x369   : > { %v3320_v18 = vmax.f32 %v4435_v53, 0.0  ;;  %v4441_v24 = vadd.f32 %v4440_v11, %v3284_v21 }
 0x36a   : > { %v4432_v27 = vadd.f32 %v4431_v20, %v4384_v13  ;;  %v4437_v28 = vadd.f32 %v4436_v51, %v4197_v31 }
 0x36b   : > { %3328 = vst [vmem:[%s5488_s30] sm:$0xff] %v3320_v18  ;;  %v3321_v29 = vmax.f32 %v4441_v24, 0.0 }
 0x36c   : > { %v3322_v30 = vmax.f32 %v4432_v27, 0.0  ;;  %v4438_v33 = vadd.f32 %v4437_v28, %v4385_v19  ;;  %v4198_v35 = vpop.f32.mrb[88].mxu1 }
 0x36d   : > { %3329 = vst [vmem:[%s5488_s30 + $0x8] sm:$0xff] %v3321_v29  ;;  %v4199_v37 = vpop.f32.mrb[89].mxu1 }
 0x36e   : > { %3330 = vst [vmem:[%s5488_s30 + $0x10] sm:$0xff] %v3322_v30  ;;  %v3323_v36 = vmax.f32 %v4438_v33, 0.0  ;;  %v4200_v41 = vadd.f32 %v4199_v37, %v4198_v35  ;;  %v4201_v42 = vpop.f32.mrb[90].mxu1 }
 0x36f   : > { %v4202_v43 = vpop.f32.mrb[91].mxu1 }
 0x370   : > { %3331 = vst [vmem:[%s5488_s30 + $0x18] sm:$0xff] %v3323_v36  ;;  %v4203_v45 = vadd.f32 %v4202_v43, %v4201_v42  ;;  %v4448_v46 = vadd.f32 %v4447_v49, %v4200_v41 }
 0x372   : > { %v4456_v12 = vadd.f32 %v4455_v5, %v4203_v45 }
 0x374   : > { %v4204_v23 = vpop.f32.mrb[92].mxu1 }
 0x375   : > { %v4205_v48 = vpop.f32.mrb[93].mxu1 }
 0x376   : > { %v4206_v50 = vadd.f32 %v4205_v48, %v4204_v23  ;;  %v4207_v51 = vpop.f32.mrb[94].mxu1 }
 0x377   : > { %v4208_v52 = vpop.f32.mrb[95].mxu1 }
 0x378   : > { %v4209_v54 = vadd.f32 %v4208_v52, %v4207_v51  ;;  %v4444_v2 = vadd.f32 %v4443_v14, %v4206_v50 }
 0x37a   : > { %v4452_v47 = vadd.f32 %v4451_v40, %v4209_v54 }
 0x37c   : > { %v4388_v55 = vpop.f32.mrb[96].mxu1 }
 0x37d   : > { %v4445_v56 = vadd.f32 %v4444_v2, %v4388_v55  ;;  %v3297_v57 = vpop.f32.mrb[97].mxu1 }
 0x37e   : > { %v4449_v58 = vadd.f32 %v4448_v46, %v3297_v57  ;;  %v4389_v38 = vpop.f32.mrb[98].mxu1 }
 0x37f   : > { %v3326_v59 = vmax.f32 %v4445_v56, 0.0  ;;  %v4453_v34 = vadd.f32 %v4452_v47, %v4389_v38  ;;  %v3300_v39 = vpop.f32.mrb[99].mxu1 }
 0x380   : > { %v3324_v49 = vmax.f32 %v4449_v58, 0.0  ;;  %v4457_v60 = vadd.f32 %v4456_v12, %v3300_v39 }
 0x381   : > { %3334 = vst [vmem:[%s5488_s30 + $0x30] sm:$0xff] %v3326_v59  ;;  %v3327_v5 = vmax.f32 %v4453_v34, 0.0 }
 0x382   : > { %3332 = vst [vmem:[%s5488_s30 + $0x20] sm:$0xff] %v3324_v49  ;;  %v3325_v26 = vmax.f32 %v4457_v60, 0.0 }
 0x383   : > { %3335 = vst [vmem:[%s5488_s30 + $0x38] sm:$0xff] %v3327_v5 }
 0x384   : > { %3333 = vst [vmem:[%s5488_s30 + $0x28] sm:$0xff] %v3325_v26 }
 0x385 PF: > { %s16_s21 = sadd.s32 1, %s4698_s21  }
 0x386   : > { %p13_p4 = scmp.ge.s32.totalorder %s16_s21, 4  }
 0x388   :  { %15 = sbr.rel (!%p13_p4) target bundleno = 1 (0x1), region = 84 }

</bundles_post_ra>
